<compile_context>
chip_gen: v6e
topology: v6e:2x2x1
jax: 0.10.0
libtpu: 0.0.40
codegen_flags: <defaults>
</compile_context>

<pallas_src>
import functools
import math

import jax
import jax.numpy as jnp
from jax.experimental import pallas as pl
from jax.experimental.pallas import tpu as pltpu


def _lt_gemm_bn_relu_kernel(patches_ref, w_ref, b_ref, gamma_ref, beta_ref,
                            o_ref, *, eps):
    """One grid step handles ALL rows (B*P) for one 128-wide output-channel tile.

    patches_ref: (BP, CK)   im2col matrix (f32)
    w_ref:       (CK, OCt)  stacked per-channel linear weights
    b_ref/gamma_ref/beta_ref: (1, OCt)
    o_ref:       (BP, OCt)
    """
    x = patches_ref[...]                                     # (BP, CK)
    w = w_ref[...]                                           # (CK, OCt)

    # Fused "conv": one full-width MXU GEMM + summed per-channel bias.
    # (The bias is cancelled exactly by BN mean-subtraction below, but it is kept
    #  so the pre-BN value matches the module; it is a single broadcast add.)
    y = jnp.dot(x, w, preferred_element_type=jnp.float32)    # (BP, OCt)
    y = y + b_ref[...]

    # BatchNorm2d, training mode: per output channel over all (batch, spatial)
    # positions == all BP rows of this tile. Biased variance, two-pass (stable).
    inv_n = 1.0 / y.shape[0]
    mean = jnp.sum(y, axis=0, keepdims=True) * inv_n          # (1, OCt)
    centered = y - mean
    var = jnp.sum(centered * centered, axis=0, keepdims=True) * inv_n
    scale = jax.lax.rsqrt(var + eps) * gamma_ref[...]         # fold gamma into scale
    out = centered * scale + beta_ref[...]

    # ReLU, single lane-dense store.
    o_ref[...] = jnp.maximum(out, 0.0).astype(o_ref.dtype)


def lt_unit_forward(x, weights, biases, gamma, beta,
                    *, kernel_size, stride, pad, eps=1e-5, oc_tile=128):
    """x: (B, C_in, H, W); weights: (C_in, OC, K^2) (PyTorch Linear layout);
    biases: (C_in, OC); gamma/beta: (OC,). Returns (B, OC, H_out, W_out)."""
    B, C, H, W = x.shape
    OC = weights.shape[1]
    K2 = kernel_size * kernel_size

    # --- wrapper-side layout: zero-pad + im2col (pure data movement, no FLOPs) ---
    x_pad = jnp.pad(x, ((0, 0), (0, 0), (pad, pad), (pad, pad)))
    H_out = (H + 2 * pad - kernel_size) // stride + 1
    W_out = (W + 2 * pad - kernel_size) // stride + 1

    cols = []
    for dh in range(kernel_size):
        for dw in range(kernel_size):
            cols.append(x_pad[:, :,
                              dh:dh + stride * H_out:stride,
                              dw:dw + stride * W_out:stride])
    # (B, C, H_out, W_out, K2) with last axis ordered dh*kernel_size + dw
    patches = jnp.stack(cols, axis=-1)
    # rows = (b, r, c) positions; columns = (channel, patch-element), channel-major
    patches = patches.transpose(0, 2, 3, 1, 4).reshape(B * H_out * W_out, C * K2)
    patches = patches.astype(jnp.float32)

    # Stack all per-channel Linear weights into one (C*K2, OC) matrix whose row
    # order matches the im2col column order; sum the per-channel biases.
    w_stack = weights.transpose(0, 2, 1).reshape(C * K2, OC).astype(jnp.float32)
    b_sum = jnp.sum(biases, axis=0).reshape(1, OC).astype(jnp.float32)
    gamma2 = gamma.reshape(1, OC).astype(jnp.float32)
    beta2 = beta.reshape(1, OC).astype(jnp.float32)

    BP = B * H_out * W_out
    CK = C * K2
    if OC % oc_tile != 0:
        oc_tile = OC                      # single full-width tile fallback
    n_oc = OC // oc_tile

    kernel = functools.partial(_lt_gemm_bn_relu_kernel, eps=eps)

    out_flat = pl.pallas_call(
        kernel,
        out_shape=jax.ShapeDtypeStruct((BP, OC), x.dtype),
        grid_spec=pltpu.PrefetchScalarGridSpec(
            num_scalar_prefetch=0,
            grid=(n_oc,),
            in_specs=[
                pl.BlockSpec((BP, CK), lambda j: (0, 0)),        # im2col (resident)
                pl.BlockSpec((CK, oc_tile), lambda j: (0, j)),   # weight tile
                pl.BlockSpec((1, oc_tile), lambda j: (0, j)),    # summed bias tile
                pl.BlockSpec((1, oc_tile), lambda j: (0, j)),    # BN gamma tile
                pl.BlockSpec((1, oc_tile), lambda j: (0, j)),    # BN beta tile
            ],
            out_specs=pl.BlockSpec((BP, oc_tile), lambda j: (0, j)),
        ),
        compiler_params=pltpu.CompilerParams(
            dimension_semantics=("parallel",)),
    )(patches, w_stack, b_sum, gamma2, beta2)

    # (B*P, OC) -> (B, OC, H_out, W_out)  (matches the module's permute + reshape)
    return out_flat.reshape(B, H_out, W_out, OC).transpose(0, 3, 1, 2)


def reference_lt_unit(x, weights, biases, gamma, beta,
                      *, kernel_size, stride, pad, eps=1e-5):
    """Pure-JAX reference mirroring the PyTorch LT_unit.forward (stride=1)."""
    B, C, H, W = x.shape
    x_pad = jnp.pad(x, ((0, 0), (0, 0), (pad, pad), (pad, pad)))
    Hp, Wp = x_pad.shape[2], x_pad.shape[3]

    patch_list = []
    for i in range(0, Wp - kernel_size + 1, stride):
        for j in range(0, Hp - kernel_size + 1, stride):
            tmp = x_pad[:, :, i:i + kernel_size, j:j + kernel_size]
            patch_list.append(tmp.reshape(B, C, kernel_size * kernel_size))
    vec = jnp.stack(patch_list, axis=2)                    # (B, C, P, K2)

    out_tmp = vec[:, 0] @ weights[0].T + biases[0]
    for k in range(1, C):
        out_tmp = out_tmp + vec[:, k] @ weights[k].T + biases[k]
    out_tmp = jnp.transpose(out_tmp, (0, 2, 1))            # (B, OC, P)
    s = int(out_tmp.shape[2] ** 0.5)
    conv = out_tmp.reshape(B, out_tmp.shape[1], s, s)

    # BatchNorm2d in training mode (batch statistics, biased variance) + ReLU
    mean = jnp.mean(conv, axis=(0, 2, 3), keepdims=True)
    var = jnp.mean((conv - mean) ** 2, axis=(0, 2, 3), keepdims=True)
    y = (conv - mean) * jax.lax.rsqrt(var + eps)
    y = y * gamma.reshape(1, -1, 1, 1) + beta.reshape(1, -1, 1, 1)
    return jnp.maximum(y, 0.0)


if __name__ == "__main__":
    # LT_unit(in_channel=4, out_channel=256, kernel_size=3, stride=1, pad=1)
    # applied to x of shape (2, 4, 16, 16). out_channel=256 gives two lane-dense
    # 128-wide output tiles (2 parallel grid steps).
    B, C_in, H, W = 2, 4, 16, 16
    out_channel, kernel_size, stride, pad = 256, 3, 1, 1

    key = jax.random.PRNGKey(0)
    kx, kw, kb, kg, kbt = jax.random.split(key, 5)

    x = jax.random.normal(kx, (B, C_in, H, W), jnp.float32)

    # nn.Linear(K^2 -> out_channel) style init, one layer per input channel.
    s = 1.0 / math.sqrt(kernel_size * kernel_size)
    weights = jax.random.uniform(kw, (C_in, out_channel, kernel_size * kernel_size),
                                 jnp.float32, -s, s)
    biases = jax.random.uniform(kb, (C_in, out_channel), jnp.float32, -s, s)

    # Non-trivial BatchNorm affine params to exercise the full BN path.
    gamma = 1.0 + 0.1 * jax.random.normal(kg, (out_channel,), jnp.float32)
    beta = 0.1 * jax.random.normal(kbt, (out_channel,), jnp.float32)

    out = lt_unit_forward(x, weights, biases, gamma, beta,
                          kernel_size=kernel_size, stride=stride, pad=pad)
    out = jax.block_until_ready(out)

    ref = reference_lt_unit(x, weights, biases, gamma, beta,
                            kernel_size=kernel_size, stride=stride, pad=pad)

    assert out.shape == (B, out_channel, H, W), out.shape
    assert jnp.allclose(out, ref, atol=1e-4, rtol=1e-4), "mismatch vs reference"

    print("KERNEL_OK")
</pallas_src>

<mosaic_0001>
module attributes {stable_mosaic.version = 11 : i64} {
  func.func @_lt_gemm_bn_relu_kernel(%arg0: i32, %arg1: memref<512x36xf32, #tpu.memory_space<vmem>>, %arg2: memref<36x128xf32, #tpu.memory_space<vmem>>, %arg3: memref<1x128xf32, #tpu.memory_space<vmem>>, %arg4: memref<1x128xf32, #tpu.memory_space<vmem>>, %arg5: memref<1x128xf32, #tpu.memory_space<vmem>>, %arg6: memref<512x128xf32, #tpu.memory_space<vmem>>) attributes {dimension_semantics = [#tpu.dimension_semantics<parallel>], iteration_bounds = array<i64: 2>, scalar_prefetch = 0 : i64, scratch_operands = 0 : i64, tpu.core_type = #tpu.core_type<tc>, window_params = [{pipeline_mode = #tpu.pipeline_mode<synchronous>, transform_indices = @transform_0, window_bounds = array<i64: 512, 36>}, {transform_indices = @transform_1, window_bounds = array<i64: 36, 128>}, {transform_indices = @transform_2, window_bounds = array<i64: 1, 128>}, {transform_indices = @transform_3, window_bounds = array<i64: 1, 128>}, {transform_indices = @transform_4, window_bounds = array<i64: 1, 128>}, {transform_indices = @transform_5, window_bounds = array<i64: 512, 128>}]} {
    %c0 = arith.constant 0 : index
    %c0_0 = arith.constant 0 : index
    %0 = vector.load %arg1[%c0, %c0_0] : memref<512x36xf32, #tpu.memory_space<vmem>>, vector<512x36xf32>
    %c0_1 = arith.constant 0 : index
    %c0_2 = arith.constant 0 : index
    %1 = vector.load %arg2[%c0_1, %c0_2] : memref<36x128xf32, #tpu.memory_space<vmem>>, vector<36x128xf32>
    %cst = arith.constant dense<0.000000e+00> : vector<512x128xf32>
    %2 = tpu.matmul %0, %1, %cst {dimension_numbers = #tpu.dot_dimension_numbers<[1], [0], [0], [1], [0, 0, 1, 1], [], []>} : vector<512x36xf32>, vector<36x128xf32>, vector<512x128xf32> -> vector<512x128xf32>
    %c0_3 = arith.constant 0 : index
    %c0_4 = arith.constant 0 : index
    %3 = vector.load %arg3[%c0_3, %c0_4] : memref<1x128xf32, #tpu.memory_space<vmem>>, vector<1x128xf32>
    %4 = vector.broadcast %3 : vector<1x128xf32> to vector<512x128xf32>
    %5 = arith.addf %2, %4 : vector<512x128xf32>
    %cst_5 = arith.constant dense<0.000000e+00> : vector<128xf32>
    %6 = vector.multi_reduction <add>, %5, %cst_5 [0] : vector<512x128xf32> to vector<128xf32>
    %7 = vector.shape_cast %6 : vector<128xf32> to vector<1x128xf32>
    %cst_6 = arith.constant 0.001953125 : f32
    %8 = vector.broadcast %cst_6 : f32 to vector<1x128xf32>
    %9 = arith.mulf %7, %8 : vector<1x128xf32>
    %10 = vector.broadcast %9 : vector<1x128xf32> to vector<512x128xf32>
    %11 = arith.subf %5, %10 : vector<512x128xf32>
    %12 = arith.mulf %11, %11 : vector<512x128xf32>
    %cst_7 = arith.constant dense<0.000000e+00> : vector<128xf32>
    %13 = vector.multi_reduction <add>, %12, %cst_7 [0] : vector<512x128xf32> to vector<128xf32>
    %14 = vector.shape_cast %13 : vector<128xf32> to vector<1x128xf32>
    %cst_8 = arith.constant 0.001953125 : f32
    %15 = vector.broadcast %cst_8 : f32 to vector<1x128xf32>
    %16 = arith.mulf %14, %15 : vector<1x128xf32>
    %cst_9 = arith.constant 9.99999974E-6 : f32
    %17 = vector.broadcast %cst_9 : f32 to vector<1x128xf32>
    %18 = arith.addf %16, %17 : vector<1x128xf32>
    %19 = math.rsqrt %18 : vector<1x128xf32>
    %c0_10 = arith.constant 0 : index
    %c0_11 = arith.constant 0 : index
    %20 = vector.load %arg4[%c0_10, %c0_11] : memref<1x128xf32, #tpu.memory_space<vmem>>, vector<1x128xf32>
    %21 = arith.mulf %19, %20 : vector<1x128xf32>
    %22 = vector.broadcast %21 : vector<1x128xf32> to vector<512x128xf32>
    %23 = arith.mulf %11, %22 : vector<512x128xf32>
    %c0_12 = arith.constant 0 : index
    %c0_13 = arith.constant 0 : index
    %24 = vector.load %arg5[%c0_12, %c0_13] : memref<1x128xf32, #tpu.memory_space<vmem>>, vector<1x128xf32>
    %25 = vector.broadcast %24 : vector<1x128xf32> to vector<512x128xf32>
    %26 = arith.addf %23, %25 : vector<512x128xf32>
    %cst_14 = arith.constant 0.000000e+00 : f32
    %27 = vector.broadcast %cst_14 : f32 to vector<512x128xf32>
    %28 = arith.maximumf %26, %27 : vector<512x128xf32>
    %c0_15 = arith.constant 0 : index
    %c0_16 = arith.constant 0 : index
    %29 = vector.load %arg6[%c0_15, %c0_16] : memref<512x128xf32, #tpu.memory_space<vmem>>, vector<512x128xf32>
    tpu.vector_store %arg6[%c0_15, %c0_16], %28 {strides = array<i32>} : memref<512x128xf32, #tpu.memory_space<vmem>>, vector<512x128xf32>,
    return
  }
  func.func @transform_0(%arg0: i32) -> (i32, i32) {
    %c0_i32 = arith.constant 0 : i32
    %c0_i32_0 = arith.constant 0 : i32
    %c0_i32_1 = arith.constant 0 : i32
    return %c0_i32, %c0_i32_0 : i32, i32
  }
  func.func @transform_1(%arg0: i32) -> (i32, i32) {
    %c0_i32 = arith.constant 0 : i32
    %c0_i32_0 = arith.constant 0 : i32
    return %c0_i32, %arg0 : i32, i32
  }
  func.func @transform_2(%arg0: i32) -> (i32, i32) {
    %c0_i32 = arith.constant 0 : i32
    %c0_i32_0 = arith.constant 0 : i32
    return %c0_i32, %arg0 : i32, i32
  }
  func.func @transform_3(%arg0: i32) -> (i32, i32) {
    %c0_i32 = arith.constant 0 : i32
    %c0_i32_0 = arith.constant 0 : i32
    return %c0_i32, %arg0 : i32, i32
  }
  func.func @transform_4(%arg0: i32) -> (i32, i32) {
    %c0_i32 = arith.constant 0 : i32
    %c0_i32_0 = arith.constant 0 : i32
    return %c0_i32, %arg0 : i32, i32
  }
  func.func @transform_5(%arg0: i32) -> (i32, i32) {
    %c0_i32 = arith.constant 0 : i32
    %c0_i32_0 = arith.constant 0 : i32
    return %c0_i32, %arg0 : i32, i32
  }
}

</mosaic_0001>

<bundles_post_ra>
// kernel: tpu_custom_call.1
= control target key start
LH: loop header
LB: loop body
LE: loop exit
PB: predicated region body
PF: predicated region fallthrough
CT: control target
= control target key end

     0   :  { %10 = vsyncpa [#allocation4], 0  ;;  %s3653_s0 = inlined_call_operand.vmem [shape: f32[512,36], index: 0, kind: input, shape index: {}]   ;;  %s3654_s1 = inlined_call_operand.vmem [shape: f32[36,256], index: 1, kind: input, shape index: {}]   ;;  %s3655_s2 = inlined_call_operand.vmem [shape: f32[1,256], index: 2, kind: input, shape index: {}]   ;;  %s3656_s3 = inlined_call_operand.vmem [shape: f32[1,256], index: 3, kind: input, shape index: {}]   ;;  %s3657_s4 = inlined_call_operand.vmem [shape: f32[1,256], index: 4, kind: input, shape index: {}]   ;;  %s3658_s5 = inlined_call_operand.hbm [shape: f32[512,256], index: 5, kind: output, shape index: {}]  }
   0x1   :  { %12 = vsyncpa [#allocation4 + $0x1], 0  ;;  %s2025_s18 = smov 0   ;;  %s2027_s19 = smov 0  }
   0x2   :  { %s2029_s20 = smov 0   ;;  %s2031_s21 = smov 0  }
   0x3 LB: > { %s2046_s22 = sadd.s32 4294967295, %s1989_s21   ;;  %s1621_s23 = sadd.s32 4294967294, %s1989_s21   ;;  %s1989_s21 = sphi %s2031_s21, %s3794_s21   ;;  %s1985_s20 = sphi %s2029_s20, %s3793_s20   ;;  %s1981_s19 = sphi %s2027_s19, %s3792_s19   ;;  %s1977_s18 = sphi %s2025_s18, %s3791_s18  }
   0x4   : > { %s2050_s24 = sadd.s32 1, %s1989_s21   ;;  %s46_s25 = sadd.s32 1, %s1985_s20 }
   0x5   : > { %s43_s26 = ssub.s32 %s1989_s21, %s2050_s24  ;;  %p53_p0 = scmp.ne.s32.totalorder %s1985_s20, %s1981_s19 }
   0x6   : > { %p44_p1 = scmp.eq.s32.totalorder %s43_s26, 0  ;;  %p54_p2 = scmp.eq.s32.totalorder %s1989_s21, 0 }
   0x7   : > { %p161_p3 = scmp.eq.s32.totalorder %s2046_s22, 1  ;;  %p166_p4 = scmp.ne.s32.totalorder %s1981_s19, %s1977_s18 }
   0x8   : > { %s2062_s27 = scalar_select %p44_p1, %s1985_s20, %s46_s25  }
   0x9   : > { %p55_p5 = por %p54_p2, %p53_p0  ;;  %p2064_p6 = por %p161_p3, %p53_p0 }
   0xa   : > { %p167_p7 = scmp.eq.s32.totalorder %s1621_s23, 1  ;;  %p1623_p9 = scmp.ge.s32.totalorder %s1989_s21, 2 }
   0xc   : > { %p2068_p8 = por %p167_p7, %p166_p4  ;;  %186 = sbr.rel (%p1623_p9) target bundleno = 24 (0x18), region = 20 }
  0x11   : > { %189 = sbr.rel (!%p55_p5) target bundleno = 24 (0x18), region = 24  ;;  %s191_s30 = sand.u32 (%p55_p5), 1, %s1985_s20  }
  0x12   : > { %s1624_s6 = sshll.u32 (%p55_p5), %s1989_s21, 3  ;;  %s1883_s7 = smul.u32 (%p55_p5), 40, %s191_s30 }
  0x13   : > { %s195_s10 = scalar_lea.vmem (%p55_p5), %s3654_s1, %s1624_s6 }
  0x14   : > { %v232_v0 = vld [vmem:[%s195_s10] sm:$0xff] (%p55_p5)  ;;  %v234_v1 = vld [vmem:[%s195_s10 + $0x10] sm:$0xff] (%p55_p5)  ;;  %s193_s11 = scalar_lea.vmem (%p55_p5), [#allocation2], %s1883_s7 }
  0x15   : > { %v236_v2 = vld [vmem:[%s195_s10 + $0x20] sm:$0xff] (%p55_p5)  ;;  %v238_v3 = vld [vmem:[%s195_s10 + $0x30] sm:$0xff] (%p55_p5)  ;;  %233 = vst [vmem:[%s193_s11] sm:$0xff] (%p55_p5), %v232_v0  ;;  %235 = vst [vmem:[%s193_s11 + $0x8] sm:$0xff] (%p55_p5), %v234_v1 }
  0x16   : > { %v240_v4 = vld [vmem:[%s195_s10 + $0x40] sm:$0xff]  ;;  %237 = vst [vmem:[%s193_s11 + $0x10] sm:$0xff] %v236_v2  ;;  %239 = vst [vmem:[%s193_s11 + $0x18] sm:$0xff] %v238_v3 }
  0x17   : > { %241 = vst [vmem:[%s193_s11 + $0x20] sm:$0xff] %v240_v4 }
  0x18 PF: > { %p1625_p10 = scmp.ge.s32.totalorder %s1989_s21, 1  ;;  %p264_p11 = scmp.lt.s32.totalorder %s1989_s21, 3 }
  0x1a   : > { %p265_p12 = pnand %p1625_p10, %p264_p11 }
  0x1c   : > { %268 = sbr.rel (%p265_p12) target bundleno = 636 (0x27c), region = 74 }
  0x21   : > { %s2083_s12 = sand.u32 1, %s1981_s19   ;;  %v316_v5 = vld [vmem:[%s3653_s0] sm:$0xff]  ;;  %vm392_vm0 = vcmask 293888   ;;  %vm585_vm1 = vcmask 1043456   ;;  %v317_v11 = vld [vmem:[%s3653_s0 + $0x8] sm:$0xff]  ;;  %v318_v13 = vld [vmem:[%s3653_s0 + $0x10] sm:$0xff] }
  0x22   : > { %s1884_s15 = smul.u32 40, %s2083_s12  ;;  %1777 = vmatprep.mubr.msk.f32.mxu0 %vm392_vm0, %v316_v5  ;;  %v348_v12 = vld [vmem:[%s3653_s0 + $0x100] sm:$0xff]  ;;  %v349_v14 = vld [vmem:[%s3653_s0 + $0x108] sm:$0xff]  ;;  %v350_v15 = vld [vmem:[%s3653_s0 + $0x110] sm:$0xff]  ;;  %p307_p13 = scmp.lt.s32.totalorder %s2046_s22, 1 }
  0x23   : > { %1825 = vmatprep.mubr.msk.f32.mxu1 %vm392_vm0, %v348_v12  ;;  %v319_v16 = vld [vmem:[%s3653_s0 + $0x18] sm:$0xff]  ;;  %v320_v17 = vld [vmem:[%s3653_s0 + $0x20] sm:$0xff]  ;;  %v321_v20 = vld [vmem:[%s3653_s0 + $0x28] sm:$0xff]  ;;  %s1626_s23 = sshll.u32 %s2083_s12, 9  ;;  %s1695_s26 = sshll.u32 %s2046_s22, 7 }
  0x24   : > { %s273_s16 = scalar_lea.vmem [#allocation2], %s1884_s15  ;;  %v351_v18 = vld [vmem:[%s3653_s0 + $0x118] sm:$0xff]  ;;  %v352_v19 = vld [vmem:[%s3653_s0 + $0x120] sm:$0xff]  ;;  %v322_v21 = vld [vmem:[%s3653_s0 + $0x30] sm:$0xff]  ;;  %s3054_s25 = scalar_lea.vmem [#allocation3], %s1626_s23 }
  0x25   : > { %v384_v6 = vld [vmem:[%s273_s16 + $0x20] sm:$0xf]  ;;  %v383_v7 = vld [vmem:[%s273_s16 + $0x18] sm:$0xff]  ;;  %v382_v8 = vld [vmem:[%s273_s16 + $0x10] sm:$0xff]  ;;  %s2344_s7 = scalar_select %p307_p13, %s2046_s22, 1 }
  0x26   : > { %1767 = vmatprep.subr.msk.mxu0 %vm585_vm1, %v384_v6  ;;  %1873 = vmatprep.subr.msk.mxu1 %vm585_vm1, %v384_v6  ;;  %v381_v9 = vld [vmem:[%s273_s16 + $0x8] sm:$0xff]  ;;  %v380_v10 = vld [vmem:[%s273_s16] sm:$0xff]  ;;  %v323_v24 = vld [vmem:[%s3653_s0 + $0x38] sm:$0xff]  ;;  %s1526_s30 = sshll.u32 %s3054_s25, 4  ;;  %s1514_s8 = scalar_lea.sflag [#allocation4], %s2083_s12  ;;  %s3594_s30 = int_to_ptr.vmem [resolvable:$true] %s1526_s30 }
  0x27   : > { %1768 = vmatpush3.msk.msra.mxu0 %vm585_vm1, %v384_v6  ;;  %1878 = vmatpush3.msk.msra.mxu1 %vm585_vm1, %v384_v6  ;;  %v353_v22 = vld [vmem:[%s3653_s0 + $0x128] sm:$0xff]  ;;  %v354_v23 = vld [vmem:[%s3653_s0 + $0x130] sm:$0xff]  ;;  %v324_v25 = vld [vmem:[%s3653_s0 + $0x40] sm:$0xff]  ;;  %s309_s10 = scalar_lea.vmem %s3655_s2, %s2344_s7  ;;  %s312_s14 = scalar_lea.vmem %s3656_s3, %s2344_s7 }
  0x28   : > { %1769 = vmatprep.subr.mxu0 %v383_v7  ;;  %1874 = vmatprep.subr.mxu1 %v383_v7  ;;  %v355_v26 = vld [vmem:[%s3653_s0 + $0x138] sm:$0xff]  ;;  %v356_v27 = vld [vmem:[%s3653_s0 + $0x140] sm:$0xff]  ;;  %v325_v28 = vld [vmem:[%s3653_s0 + $0x48] sm:$0xff]  ;;  %s315_s17 = scalar_lea.vmem %s3657_s4, %s2344_s7  ;;  %s3584_s7 = scalar_lea.hbm %s3658_s5, %s1695_s26 }
  0x29   : > { %1770 = vmatpush3.msra.mxu0 %v383_v7  ;;  %1879 = vmatpush3.msra.mxu1 %v383_v7  ;;  %v326_v29 = vld [vmem:[%s3653_s0 + $0x50] sm:$0xff]  ;;  %v357_v30 = vld [vmem:[%s3653_s0 + $0x148] sm:$0xff]  ;;  %v327_v32 = vld [vmem:[%s3653_s0 + $0x58] sm:$0xff]  ;;  %s1929_s9 = scalar_lea.vmem %s3594_s30, 8192 }
  0x2a   : > { %1771 = vmatprep.subr.mxu0 %v382_v8  ;;  %1875 = vmatprep.subr.mxu1 %v382_v8  ;;  %v358_v31 = vld [vmem:[%s3653_s0 + $0x150] sm:$0xff]  ;;  %v328_v33 = vld [vmem:[%s3653_s0 + $0x60] sm:$0xff]  ;;  %v359_v34 = vld [vmem:[%s3653_s0 + $0x158] sm:$0xff]  ;;  %p1930_p0 = scmp.ne.s32.totalorder %s3594_s30, %s1929_s9 }
  0x2b   : > { %1772 = vmatpush3.msra.mxu0 %v382_v8  ;;  %1880 = vmatpush3.msra.mxu1 %v382_v8  ;;  %v360_v35 = vld [vmem:[%s3653_s0 + $0x160] sm:$0xff]  ;;  %v329_v36 = vld [vmem:[%s3653_s0 + $0x68] sm:$0xff]  ;;  %v330_v37 = vld [vmem:[%s3653_s0 + $0x70] sm:$0xff] }
  0x2c   : > { %1773 = vmatprep.subr.mxu0 %v381_v9  ;;  %1876 = vmatprep.subr.mxu1 %v381_v9  ;;  %v361_v38 = vld [vmem:[%s3653_s0 + $0x168] sm:$0xff]  ;;  %v362_v39 = vld [vmem:[%s3653_s0 + $0x170] sm:$0xff]  ;;  %v331_v40 = vld [vmem:[%s3653_s0 + $0x78] sm:$0xff]  ;;  %p1931_p1 = pnand %p1930_p0, %p2064_p6 }
  0x2d   : > { %1774 = vmatpush3.msra.mxu0 %v381_v9  ;;  %1881 = vmatpush3.msra.mxu1 %v381_v9  ;;  %v332_v41 = vld [vmem:[%s3653_s0 + $0x80] sm:$0xff]  ;;  %v363_v42 = vld [vmem:[%s3653_s0 + $0x178] sm:$0xff]  ;;  %v333_v44 = vld [vmem:[%s3653_s0 + $0x88] sm:$0xff] }
  0x2e   : > { %1775 = vmatprep.subr.mxu0 %v380_v10  ;;  %1877 = vmatprep.subr.mxu1 %v380_v10  ;;  %v364_v43 = vld [vmem:[%s3653_s0 + $0x180] sm:$0xff]  ;;  %v334_v45 = vld [vmem:[%s3653_s0 + $0x90] sm:$0xff]  ;;  %v365_v46 = vld [vmem:[%s3653_s0 + $0x188] sm:$0xff]  ;;  %p1932_p2 = pneg %p1931_p1 }
  0x2f   : > { %1776 = vmatpush3.msra.mxu0 %v380_v10  ;;  %1882 = vmatpush3.msra.mxu1 %v380_v10  ;;  %v366_v47 = vld [vmem:[%s3653_s0 + $0x190] sm:$0xff]  ;;  %v335_v48 = vld [vmem:[%s3653_s0 + $0x98] sm:$0xff]  ;;  %v336_v49 = vld [vmem:[%s3653_s0 + $0xa0] sm:$0xff] }
  0x30   : > { %1778 = vmatmul.mubr.msk.f32.vlgmr.msra.gmra.mxu0 %vm392_vm0, %v317_v11  ;;  %1826 = vmatmul.mubr.msk.f32.vlgmr.msra.gmra.mxu1 %vm392_vm0, %v349_v14  ;;  %v367_v50 = vld [vmem:[%s3653_s0 + $0x198] sm:$0xff]  ;;  %v368_v51 = vld [vmem:[%s3653_s0 + $0x1a0] sm:$0xff]  ;;  %v337_v52 = vld [vmem:[%s3653_s0 + $0xa8] sm:$0xff] }
  0x31   : > { %1780 = vmatprep.mubr.msk.f32.mxu0 %vm392_vm0, %v318_v13  ;;  %1828 = vmatprep.mubr.msk.f32.mxu1 %vm392_vm0, %v350_v15  ;;  %v338_v53 = vld [vmem:[%s3653_s0 + $0xb0] sm:$0xff]  ;;  %v369_v54 = vld [vmem:[%s3653_s0 + $0x1a8] sm:$0xff]  ;;  %v339_v56 = vld [vmem:[%s3653_s0 + $0xb8] sm:$0xff] }
  0x32   : > { %v370_v55 = vld [vmem:[%s3653_s0 + $0x1b0] sm:$0xff]  ;;  %v340_v57 = vld [vmem:[%s3653_s0 + $0xc0] sm:$0xff]  ;;  %v371_v58 = vld [vmem:[%s3653_s0 + $0x1b8] sm:$0xff] }
  0x33   : > { %v372_v59 = vld [vmem:[%s3653_s0 + $0x1c0] sm:$0xff]  ;;  %v341_v60 = vld [vmem:[%s3653_s0 + $0xc8] sm:$0xff]  ;;  %v342_v61 = vld [vmem:[%s3653_s0 + $0xd0] sm:$0xff] }
  0x34   : > { %1781 = vmatmul.mubr.msk.f32.gmra.mxu0 %vm392_vm0, %v319_v16  ;;  %1829 = vmatmul.mubr.msk.f32.gmra.mxu1 %vm392_vm0, %v351_v18  ;;  %v373_v62 = vld [vmem:[%s3653_s0 + $0x1c8] sm:$0xff]  ;;  %v374_v63 = vld [vmem:[%s3653_s0 + $0x1d0] sm:$0xff]  ;;  %v343_v0 = vld [vmem:[%s3653_s0 + $0xd8] sm:$0xff] }
  0x35   : > { %1783 = vmatprep.mubr.msk.f32.mxu0 %vm392_vm0, %v320_v17  ;;  %1831 = vmatprep.mubr.msk.f32.mxu1 %vm392_vm0, %v352_v19  ;;  %v344_v1 = vld [vmem:[%s3653_s0 + $0xe0] sm:$0xff]  ;;  %v375_v2 = vld [vmem:[%s3653_s0 + $0x1d8] sm:$0xff]  ;;  %v345_v4 = vld [vmem:[%s3653_s0 + $0xe8] sm:$0xff] }
  0x36   : > { %v376_v3 = vld [vmem:[%s3653_s0 + $0x1e0] sm:$0xff]  ;;  %v346_v5 = vld [vmem:[%s3653_s0 + $0xf0] sm:$0xff]  ;;  %v377_v6 = vld [vmem:[%s3653_s0 + $0x1e8] sm:$0xff] }
  0x37   : > { %v378_v7 = vld [vmem:[%s3653_s0 + $0x1f0] sm:$0xff]  ;;  %v347_v8 = vld [vmem:[%s3653_s0 + $0xf8] sm:$0xff]  ;;  %v2352_v12 = vld [vmem:[%s309_s10] ss:$0 sm:$0xff]  ;;  %s1991_s10 = smov [#allocation3]  }
  0x38   : > { %1784 = vmatmul.mubr.msk.f32.gmra.mxu0 %vm392_vm0, %v321_v20  ;;  %1832 = vmatmul.mubr.msk.f32.gmra.mxu1 %vm392_vm0, %v353_v22  ;;  %v379_v9 = vld [vmem:[%s3653_s0 + $0x1f8] sm:$0xff]  ;;  %s1933_s11 = sshll.u32 %s1991_s10, 4  ;;  %s1934_s11 = int_to_ptr.vmem [resolvable:$false] %s1933_s11 }
  0x39   : > { %1786 = vmatprep.mubr.msk.f32.mxu0 %vm392_vm0, %v322_v21  ;;  %1834 = vmatprep.mubr.msk.f32.mxu1 %vm392_vm0, %v354_v23  ;;  %s1935_s13 = scalar_lea.vmem %s1934_s11, 16384  ;;  %p1936_p3 = scmp.lt.s32.totalorder %s3594_s30, %s1934_s11 }
  0x3a   : > { %p1937_p4 = scmp.lt.s32.totalorder %s1935_s13, %s1929_s9 }
  0x3c   : > { %1787 = vmatmul.mubr.msk.f32.gmra.mxu0 %vm392_vm0, %v323_v24  ;;  %1835 = vmatmul.mubr.msk.f32.gmra.mxu1 %vm392_vm0, %v355_v26  ;;  %p1938_p5 = por %p1937_p4, %p1936_p3 }
  0x3d   : > { %1789 = vmatprep.mubr.msk.f32.mxu0 %vm392_vm0, %v324_v25  ;;  %1837 = vmatprep.mubr.msk.f32.mxu1 %vm392_vm0, %v356_v27 }
  0x3e   : > { %p1939_p7 = pnand %p1938_p5, %p1932_p2 }
  0x40   : > { %1790 = vmatmul.mubr.msk.f32.gmra.mxu0 %vm392_vm0, %v325_v28  ;;  %1838 = vmatmul.mubr.msk.f32.gmra.mxu1 %vm392_vm0, %v357_v30 }
  0x41   : > { %1792 = vmatprep.mubr.msk.f32.mxu0 %vm392_vm0, %v326_v29  ;;  %1840 = vmatprep.mubr.msk.f32.mxu1 %vm392_vm0, %v358_v31 }
  0x44   : > { %1793 = vmatmul.mubr.msk.f32.gmra.mxu0 %vm392_vm0, %v327_v32  ;;  %1841 = vmatmul.mubr.msk.f32.gmra.mxu1 %vm392_vm0, %v359_v34 }
  0x45   : > { %1795 = vmatprep.mubr.msk.f32.mxu0 %vm392_vm0, %v328_v33  ;;  %1843 = vmatprep.mubr.msk.f32.mxu1 %vm392_vm0, %v360_v35 }
  0x48   : > { %1796 = vmatmul.mubr.msk.f32.gmra.mxu0 %vm392_vm0, %v329_v36  ;;  %1844 = vmatmul.mubr.msk.f32.gmra.mxu1 %vm392_vm0, %v361_v38 }
  0x49   : > { %1798 = vmatprep.mubr.msk.f32.mxu0 %vm392_vm0, %v330_v37  ;;  %1846 = vmatprep.mubr.msk.f32.mxu1 %vm392_vm0, %v362_v39 }
  0x4c   : > { %1799 = vmatmul.mubr.msk.f32.gmra.mxu0 %vm392_vm0, %v331_v40  ;;  %1847 = vmatmul.mubr.msk.f32.gmra.mxu1 %vm392_vm0, %v363_v42 }
  0x4d   : > { %1801 = vmatprep.mubr.msk.f32.mxu0 %vm392_vm0, %v332_v41  ;;  %1849 = vmatprep.mubr.msk.f32.mxu1 %vm392_vm0, %v364_v43 }
  0x50   : > { %1802 = vmatmul.mubr.msk.f32.gmra.mxu0 %vm392_vm0, %v333_v44  ;;  %1850 = vmatmul.mubr.msk.f32.gmra.mxu1 %vm392_vm0, %v365_v46 }
  0x51   : > { %1804 = vmatprep.mubr.msk.f32.mxu0 %vm392_vm0, %v334_v45  ;;  %1852 = vmatprep.mubr.msk.f32.mxu1 %vm392_vm0, %v366_v47 }
  0x54   : > { %1805 = vmatmul.mubr.msk.f32.gmra.mxu0 %vm392_vm0, %v335_v48  ;;  %1853 = vmatmul.mubr.msk.f32.gmra.mxu1 %vm392_vm0, %v367_v50 }
  0x55   : > { %1807 = vmatprep.mubr.msk.f32.mxu0 %vm392_vm0, %v336_v49  ;;  %1855 = vmatprep.mubr.msk.f32.mxu1 %vm392_vm0, %v368_v51 }
  0x58   : > { %1808 = vmatmul.mubr.msk.f32.gmra.mxu0 %vm392_vm0, %v337_v52  ;;  %1856 = vmatmul.mubr.msk.f32.gmra.mxu1 %vm392_vm0, %v369_v54 }
  0x59   : > { %1810 = vmatprep.mubr.msk.f32.mxu0 %vm392_vm0, %v338_v53  ;;  %1858 = vmatprep.mubr.msk.f32.mxu1 %vm392_vm0, %v370_v55 }
  0x5c   : > { %1811 = vmatmul.mubr.msk.f32.gmra.mxu0 %vm392_vm0, %v339_v56  ;;  %1859 = vmatmul.mubr.msk.f32.gmra.mxu1 %vm392_vm0, %v371_v58 }
  0x5d   : > { %1813 = vmatprep.mubr.msk.f32.mxu0 %vm392_vm0, %v340_v57  ;;  %1861 = vmatprep.mubr.msk.f32.mxu1 %vm392_vm0, %v372_v59 }
  0x60   : > { %1814 = vmatmul.mubr.msk.f32.gmra.mxu0 %vm392_vm0, %v341_v60  ;;  %1862 = vmatmul.mubr.msk.f32.gmra.mxu1 %vm392_vm0, %v373_v62 }
  0x61   : > { %1816 = vmatprep.mubr.msk.f32.mxu0 %vm392_vm0, %v342_v61  ;;  %1864 = vmatprep.mubr.msk.f32.mxu1 %vm392_vm0, %v374_v63 }
  0x64   : > { %1817 = vmatmul.mubr.msk.f32.gmra.mxu0 %vm392_vm0, %v343_v0  ;;  %1865 = vmatmul.mubr.msk.f32.gmra.mxu1 %vm392_vm0, %v375_v2 }
  0x65   : > { %1819 = vmatprep.mubr.msk.f32.mxu0 %vm392_vm0, %v344_v1  ;;  %1867 = vmatprep.mubr.msk.f32.mxu1 %vm392_vm0, %v376_v3 }
  0x68   : > { %1820 = vmatmul.mubr.msk.f32.gmra.mxu0 %vm392_vm0, %v345_v4  ;;  %1868 = vmatmul.mubr.msk.f32.gmra.mxu1 %vm392_vm0, %v377_v6 }
  0x69   : > { %1822 = vmatprep.mubr.msk.f32.mxu0 %vm392_vm0, %v346_v5  ;;  %1870 = vmatprep.mubr.msk.f32.mxu1 %vm392_vm0, %v378_v7 }
  0x6c   : > { %1823 = vmatmul.mubr.msk.f32.gmra.mxu0 %vm392_vm0, %v347_v8  ;;  %1871 = vmatmul.mubr.msk.f32.gmra.mxu1 %vm392_vm0, %v379_v9 }
  0xf0   : > { %v1779_v10 = vpop.f32.mrf.mxu0  ;;  %v2350_v11 = vpop.f32.mrf.mxu1 }
  0xf1   : > { %v2360_v17 = vadd.f32 %v1779_v10, %v2352_v12 }
  0xf2   : > { %v655_v13 = vpop.f32.mrf.mxu0  ;;  %v2357_v16 = vpop.f32.mrf.mxu1 }
  0xf3   : > { %v2355_v14 = vadd.f32 %v2352_v12, %v655_v13 }
  0xf4   : > { %v1782_v15 = vpop.f32.mrf.mxu0  ;;  %v2367_v22 = vpop.f32.mrf.mxu1 }
  0xf5   : > { %v974_v19 = vadd.f32 %v2360_v17, %v2355_v14  ;;  %v2370_v23 = vadd.f32 %v1782_v15, %v2352_v12 }
  0xf6   : > { %v665_v18 = vpop.f32.mrf.mxu0  ;;  %v2377_v29 = vpop.f32.mrf.mxu1 }
  0xf7   : > { %v2365_v20 = vadd.f32 %v2352_v12, %v665_v18 }
  0xf8   : > { %v1785_v21 = vpop.f32.mrf.mxu0  ;;  %v2387_v36 = vpop.f32.mrf.mxu1 }
  0xf9   : > { %v975_v24 = vadd.f32 %v974_v19, %v2365_v20  ;;  %v2380_v30 = vadd.f32 %v1785_v21, %v2352_v12 }
  0xfa   : > { %v675_v25 = vpop.f32.mrf.mxu0  ;;  %v2397_v43 = vpop.f32.mrf.mxu1 }
  0xfb   : > { %v976_v26 = vadd.f32 %v975_v24, %v2370_v23  ;;  %v2375_v27 = vadd.f32 %v2352_v12, %v675_v25 }
  0xfc   : > { %v1788_v28 = vpop.f32.mrf.mxu0  ;;  %v2407_v50 = vpop.f32.mrf.mxu1 }
  0xfd   : > { %v977_v31 = vadd.f32 %v976_v26, %v2375_v27  ;;  %v2390_v37 = vadd.f32 %v1788_v28, %v2352_v12 }
  0xfe   : > { %v685_v32 = vpop.f32.mrf.mxu0  ;;  %v2417_v57 = vpop.f32.mrf.mxu1 }
  0xff   : > { %v2384_v33 = vadd.f32 %v2352_v12, %v685_v32  ;;  %v978_v34 = vadd.f32 %v977_v31, %v2380_v30 }
 0x100   : > { %v1791_v35 = vpop.f32.mrf.mxu0  ;;  %v2427_v0 = vpop.f32.mrf.mxu1 }
 0x101   : > { %v979_v38 = vadd.f32 %v978_v34, %v2384_v33  ;;  %v2400_v44 = vadd.f32 %v1791_v35, %v2352_v12 }
 0x102   : > { %v695_v39 = vpop.f32.mrf.mxu0  ;;  %v2437_v7 = vpop.f32.mrf.mxu1 }
 0x103   : > { %v2394_v40 = vadd.f32 %v2352_v12, %v695_v39  ;;  %v980_v41 = vadd.f32 %v979_v38, %v2390_v37 }
 0x104   : > { %v1794_v42 = vpop.f32.mrf.mxu0  ;;  %v2447_v19 = vpop.f32.mrf.mxu1 }
 0x105   : > { %v981_v45 = vadd.f32 %v980_v41, %v2394_v40  ;;  %v2410_v51 = vadd.f32 %v1794_v42, %v2352_v12 }
 0x106   : > { %v705_v46 = vpop.f32.mrf.mxu0  ;;  %v865_v32 = vpop.f32.mrf.mxu1 }
 0x107   : > { %v2404_v47 = vadd.f32 %v2352_v12, %v705_v46  ;;  %v982_v48 = vadd.f32 %v981_v45, %v2400_v44 }
 0x108   : > { %v1797_v49 = vpop.f32.mrf.mxu0  ;;  %v2465_v45 = vpop.f32.mrf.mxu1 }
 0x109   : > { %v983_v52 = vadd.f32 %v982_v48, %v2404_v47  ;;  %v2420_v58 = vadd.f32 %v1797_v49, %v2352_v12 }
 0x10a   : > { %v715_v53 = vpop.f32.mrf.mxu0 }
 0x10b   : > { %v2414_v54 = vadd.f32 %v2352_v12, %v715_v53  ;;  %v984_v55 = vadd.f32 %v983_v52, %v2410_v51 }
 0x10c   : > { %v1800_v56 = vpop.f32.mrf.mxu0 }
 0x10d   : > { %v985_v59 = vadd.f32 %v984_v55, %v2414_v54  ;;  %v2430_v1 = vadd.f32 %v1800_v56, %v2352_v12  ;;  %v875_v56 = vpop.f32.mrf.mxu1 }
 0x10e   : > { %v725_v60 = vpop.f32.mrf.mxu0 }
 0x10f   : > { %v2424_v61 = vadd.f32 %v2352_v12, %v725_v60  ;;  %v986_v62 = vadd.f32 %v985_v59, %v2420_v58 }
 0x110   : > { %v1803_v63 = vpop.f32.mrf.mxu0 }
 0x111   : > { %v987_v2 = vadd.f32 %v986_v62, %v2424_v61  ;;  %v2440_v8 = vadd.f32 %v1803_v63, %v2352_v12 }
 0x112   : > { %v735_v3 = vpop.f32.mrf.mxu0 }
 0x113   : > { %v2434_v4 = vadd.f32 %v2352_v12, %v735_v3  ;;  %v988_v5 = vadd.f32 %v987_v2, %v2430_v1 }
 0x114   : > { %v1806_v6 = vpop.f32.mrf.mxu0 }
 0x115   : > { %v989_v9 = vadd.f32 %v988_v5, %v2434_v4  ;;  %v2450_v21 = vadd.f32 %v1806_v6, %v2352_v12  ;;  %v1848_v5 = vpop.f32.mrf.mxu1 }
 0x116   : > { %v745_v10 = vpop.f32.mrf.mxu0 }
 0x117   : > { %v2444_v13 = vadd.f32 %v2352_v12, %v745_v10  ;;  %v990_v15 = vadd.f32 %v989_v9, %v2440_v8 }
 0x118   : > { %v1809_v18 = vpop.f32.mrf.mxu0 }
 0x119   : > { %v991_v24 = vadd.f32 %v990_v15, %v2444_v13  ;;  %v2458_v34 = vadd.f32 %v1809_v18, %v2352_v12 }
 0x11a   : > { %v755_v25 = vpop.f32.mrf.mxu0 }
 0x11b   : > { %v2454_v26 = vadd.f32 %v2352_v12, %v755_v25  ;;  %v992_v28 = vadd.f32 %v991_v24, %v2450_v21  ;;  %v885_v25 = vpop.f32.mrf.mxu1 }
 0x11c   : > { %v1812_v31 = vpop.f32.mrf.mxu0 }
 0x11d   : > { %v993_v35 = vadd.f32 %v992_v28, %v2454_v26  ;;  %v2468_v46 = vadd.f32 %v1812_v31, %v2352_v12 }
 0x11e   : > { %v765_v38 = vpop.f32.mrf.mxu0 }
 0x11f   : > { %v2462_v39 = vadd.f32 %v2352_v12, %v765_v38  ;;  %v994_v41 = vadd.f32 %v993_v35, %v2458_v34 }
 0x120   : > { %v1815_v42 = vpop.f32.mrf.mxu0 }
 0x121   : > { %v995_v48 = vadd.f32 %v994_v41, %v2462_v39  ;;  %v2476_v59 = vadd.f32 %v1815_v42, %v2352_v12  ;;  %v1851_v42 = vpop.f32.mrf.mxu1 }
 0x122   : > { %v775_v49 = vpop.f32.mrf.mxu0 }
 0x123   : > { %v2472_v52 = vadd.f32 %v2352_v12, %v775_v49  ;;  %v996_v53 = vadd.f32 %v995_v48, %v2468_v46 }
 0x124   : > { %v1818_v55 = vpop.f32.mrf.mxu0 }
 0x125   : > { %v997_v60 = vadd.f32 %v996_v53, %v2472_v52  ;;  %v2484_v6 = vadd.f32 %v1818_v55, %v2352_v12  ;;  %v2505_v53 = vadd.f32 %v2352_v12, %v2357_v16  ;;  %v2520_v16 = vadd.f32 %v2367_v22, %v2352_v12 }
 0x126   : > { %v785_v62 = vpop.f32.mrf.mxu0 }
 0x127   : > { %v2480_v63 = vadd.f32 %v2352_v12, %v785_v62  ;;  %v998_v2 = vadd.f32 %v997_v60, %v2476_v59  ;;  %3695 = vst [vmem:[#allocation6_spill] sm:$0xff] %v2484_v6  ;;  %3700 = vst [vmem:[#allocation11_spill] sm:$0xff] %v2505_v53  ;;  %v895_v60 = vpop.f32.mrf.mxu1  ;;  %v2510_v62 = vadd.f32 %v2350_v11, %v2352_v12 }
 0x128   : > { %v1821_v3 = vpop.f32.mrf.mxu0  ;;  %3703 = vst [vmem:[#allocation14_spill] sm:$0xff] %v2520_v16 }
 0x129   : > { %v999_v9 = vadd.f32 %v998_v2, %v2480_v63  ;;  %v2492_v28 = vadd.f32 %v1821_v3, %v2352_v12  ;;  %3701 = vst [vmem:[#allocation12_spill] sm:$0xff] %v2510_v62  ;;  %v2515_v3 = vadd.f32 %v2352_v12, %v2377_v29  ;;  %v2530_v29 = vadd.f32 %v2387_v36, %v2352_v12 }
 0x12a   : > { %v795_v10 = vpop.f32.mrf.mxu0 }
 0x12b   : > { %v2488_v15 = vadd.f32 %v2352_v12, %v795_v10  ;;  %v1000_v18 = vadd.f32 %v999_v9, %v2484_v6  ;;  %3697 = vst [vmem:[#allocation8_spill] sm:$0xff] %v2492_v28  ;;  %3702 = vst [vmem:[#allocation13_spill] sm:$0xff] %v2515_v3  ;;  %v1854_v10 = vpop.f32.mrf.mxu1 }
 0x12c   : > { %v1824_v24 = vpop.f32.mrf.mxu0  ;;  %3705 = vst [vmem:[#allocation16_spill] sm:$0xff] %v2530_v29 }
 0x12d   : > { %3696 = vst [vmem:[#allocation7_spill] sm:$0xff] %v2488_v15  ;;  %v1001_v31 = vadd.f32 %v1000_v18, %v2488_v15  ;;  %v2500_v48 = vadd.f32 %v1824_v24, %v2352_v12  ;;  %v2525_v24 = vadd.f32 %v2352_v12, %v2397_v43  ;;  %v2540_v43 = vadd.f32 %v2407_v50, %v2352_v12 }
 0x12e   : > { %v805_v35 = vpop.f32.mrf.mxu0 }
 0x12f   : > { %v2496_v38 = vadd.f32 %v2352_v12, %v805_v35  ;;  %v1002_v41 = vadd.f32 %v1001_v31, %v2492_v28  ;;  %3699 = vst [vmem:[#allocation10_spill] sm:$0xff] %v2500_v48  ;;  %3704 = vst [vmem:[#allocation15_spill] sm:$0xff] %v2525_v24  ;;  %v905_v31 = vpop.f32.mrf.mxu1 }
 0x130   : > { %3707 = vst [vmem:[#allocation18_spill] sm:$0xff] %v2540_v43 }
 0x131   : > { %3698 = vst [vmem:[#allocation9_spill] sm:$0xff] %v2496_v38  ;;  %v1003_v49 = vadd.f32 %v1002_v41, %v2496_v38  ;;  %v2535_v41 = vadd.f32 %v2352_v12, %v2417_v57  ;;  %v2550_v57 = vadd.f32 %v2427_v0, %v2352_v12 }
 0x133   : > { %v1004_v55 = vadd.f32 %v1003_v49, %v2500_v48  ;;  %3706 = vst [vmem:[#allocation17_spill] sm:$0xff] %v2535_v41  ;;  %v1857_v49 = vpop.f32.mrf.mxu1  ;;  %3709 = vst [vmem:[#allocation20_spill] sm:$0xff] %v2550_v57 }
 0x135   : > { %v1005_v2 = vadd.f32 %v1004_v55, %v2505_v53 }
 0x137   : > { %v1006_v9 = vadd.f32 %v1005_v2, %v2510_v62  ;;  %v2545_v2 = vadd.f32 %v2352_v12, %v2437_v7 }
 0x139   : > { %v1007_v18 = vadd.f32 %v1006_v9, %v2515_v3  ;;  %3708 = vst [vmem:[#allocation19_spill] sm:$0xff] %v2545_v2  ;;  %v915_v9 = vpop.f32.mrf.mxu1 }
 0x13b   : > { %v1008_v11 = vadd.f32 %v1007_v18, %v2520_v16 }
 0x13d   : > { %v1009_v35 = vadd.f32 %v1008_v11, %v2525_v24  ;;  %v2554_v11 = vadd.f32 %v2352_v12, %v865_v32 }
 0x13f   : > { %v1010_v22 = vadd.f32 %v1009_v35, %v2530_v29  ;;  %3710 = vst [vmem:[#allocation21_spill] sm:$0xff] %v2554_v11  ;;  %v1860_v35 = vpop.f32.mrf.mxu1  ;;  %v901_v29 = vadd.f32 %v1851_v42, %v2352_v12 }
 0x140   : > { %v931_v42 = vadd.f32 %v1860_v35, %v2352_v12 }
 0x141   : > { %v1011_v55 = vadd.f32 %v1010_v22, %v2535_v41  ;;  %v2559_v22 = vadd.f32 %v2447_v19, %v2352_v12  ;;  %v891_v19 = vadd.f32 %v1848_v5, %v2352_v12  ;;  %v921_v5 = vadd.f32 %v1857_v49, %v2352_v12 }
 0x143   : > { %v1012_v36 = vadd.f32 %v1011_v55, %v2540_v43  ;;  %3711 = vst [vmem:[#allocation22_spill] sm:$0xff] %v2559_v22  ;;  %v2563_v55 = vadd.f32 %v2352_v12, %v875_v56  ;;  %v925_v43 = vpop.f32.mrf.mxu1 }
 0x145   : > { %v1013_v18 = vadd.f32 %v1012_v36, %v2545_v2  ;;  %3712 = vst [vmem:[#allocation23_spill] sm:$0xff] %v2563_v55  ;;  %v881_v36 = vadd.f32 %v2465_v45, %v2352_v12  ;;  %v1863_v2 = vpop.f32.mrf.mxu1 }
 0x147   : > { %v1014_v50 = vadd.f32 %v1013_v18, %v2550_v57  ;;  %v886_v18 = vadd.f32 %v2352_v12, %v885_v25  ;;  %v935_v56 = vpop.f32.mrf.mxu1  ;;  %v916_v25 = vadd.f32 %v2352_v12, %v915_v9 }
 0x149   : > { %v1015_v7 = vadd.f32 %v1014_v50, %v2554_v11  ;;  %v896_v50 = vadd.f32 %v2352_v12, %v895_v60  ;;  %v1866_v45 = vpop.f32.mrf.mxu1  ;;  %v926_v60 = vadd.f32 %v2352_v12, %v925_v43 }
 0x14a   : > { %v951_v49 = vadd.f32 %v1866_v45, %v2352_v12 }
 0x14b   : > { %v1016_v0 = vadd.f32 %v1015_v7, %v2559_v22  ;;  %v906_v22 = vadd.f32 %v2352_v12, %v905_v31  ;;  %v945_v16 = vpop.f32.mrf.mxu1  ;;  %v936_v31 = vadd.f32 %v2352_v12, %v935_v56 }
 0x14c   : > { %v946_v9 = vadd.f32 %v2352_v12, %v945_v16 }
 0x14d   : > { %v1017_v32 = vadd.f32 %v1016_v0, %v2563_v55  ;;  %v911_v0 = vadd.f32 %v1854_v10, %v2352_v12  ;;  %v1869_v3 = vpop.f32.mrf.mxu1  ;;  %v941_v10 = vadd.f32 %v1863_v2, %v2352_v12 }
 0x14e   : > { %v961_v35 = vadd.f32 %v1869_v3, %v2352_v12 }
 0x14f   : > { %v1018_v57 = vadd.f32 %v1017_v32, %v881_v36  ;;  %v955_v62 = vpop.f32.mrf.mxu1 }
 0x150   : > { %v956_v43 = vadd.f32 %v2352_v12, %v955_v62 }
 0x151   : > { %v1019_v41 = vadd.f32 %v1018_v57, %v886_v18  ;;  %v1872_v53 = vpop.f32.mrf.mxu1 }
 0x152   : > { %v971_v2 = vadd.f32 %v1872_v53, %v2352_v12 }
 0x153   : > { %v1020_v11 = vadd.f32 %v1019_v41, %v891_v19  ;;  %v965_v48 = vpop.f32.mrf.mxu1 }
 0x154   : > { %v966_v56 = vadd.f32 %v2352_v12, %v965_v48 }
 0x155   : > { %v1021_v7 = vadd.f32 %v1020_v11, %v896_v50 }
 0x157   : > { %v1022_v24 = vadd.f32 %v1021_v7, %v901_v29 }
 0x159   : > { %v1023_v55 = vadd.f32 %v1022_v24, %v906_v22 }
 0x15b   : > { %v1024_v32 = vadd.f32 %v1023_v55, %v911_v0 }
 0x15d   : > { %v1025_v57 = vadd.f32 %v1024_v32, %v916_v25 }
 0x15f   : > { %v1026_v41 = vadd.f32 %v1025_v57, %v921_v5 }
 0x161   : > { %v1027_v11 = vadd.f32 %v1026_v41, %v926_v60 }
 0x163   : > { %v1028_v7 = vadd.f32 %v1027_v11, %v931_v42 }
 0x165   : > { %v1029_v24 = vadd.f32 %v1028_v7, %v936_v31 }
 0x167   : > { %v1030_v55 = vadd.f32 %v1029_v24, %v941_v10 }
 0x169   : > { %v1031_v32 = vadd.f32 %v1030_v55, %v946_v9 }
 0x16b   : > { %v1032_v57 = vadd.f32 %v1031_v32, %v951_v49 }
 0x16d   : > { %v1033_v41 = vadd.f32 %v1032_v57, %v956_v43 }
 0x16f   : > { %v1034_v11 = vadd.f32 %v1033_v41, %v961_v35 }
 0x171   : > { %v1035_v7 = vadd.f32 %v1034_v11, %v966_v56 }
 0x173   : > { %v1036_v38 = vadd.f32 %v1035_v7, %v971_v2 }
 0x175   : > { %v1037_v16 = vrot.slane %v1036_v38, 4 }
 0x177   : > { %v1038_v24 = vadd.f32 %v1037_v16, %v1036_v38 }
 0x179   : > { %v1039_v28 = vrot.slane %v1038_v24, 2 }
 0x17b   : > { %v1040_v15 = vadd.f32 %v1039_v28, %v1038_v24 }
 0x17d   : > { %v1041_v45 = vrot.slane %v1040_v15, 1 }
 0x17f   : > { %v1042_v55 = vadd.f32 %v1041_v45, %v1040_v15 }
 0x181   : > { %v2587_v6 = vmul.f32 0.001953125, %v1042_v55 }
 0x183   : > { %v2590_v62 = vsub.f32 %v881_v36, %v2587_v6  ;;  %v2593_v3 = vsub.f32 %v886_v18, %v2587_v6  ;;  %v2596_v48 = vsub.f32 %v891_v19, %v2587_v6  ;;  %v2599_v12 = vsub.f32 %v896_v50, %v2587_v6 }
 0x184   : > { %v2602_v38 = vsub.f32 %v901_v29, %v2587_v6  ;;  %v2605_v28 = vsub.f32 %v906_v22, %v2587_v6  ;;  %v2608_v15 = vsub.f32 %v911_v0, %v2587_v6  ;;  %v2611_v53 = vsub.f32 %v916_v25, %v2587_v6 }
 0x185   : > { %v2614_v36 = vsub.f32 %v921_v5, %v2587_v6  ;;  %v2617_v18 = vsub.f32 %v926_v60, %v2587_v6  ;;  %v2620_v19 = vsub.f32 %v931_v42, %v2587_v6  ;;  %v2623_v29 = vsub.f32 %v936_v31, %v2587_v6 }
 0x186   : > { %v2626_v22 = vsub.f32 %v941_v10, %v2587_v6  ;;  %v2629_v50 = vsub.f32 %v946_v9, %v2587_v6  ;;  %v2632_v0 = vsub.f32 %v951_v49, %v2587_v6  ;;  %v2635_v25 = vsub.f32 %v956_v43, %v2587_v6 }
 0x187   : > { %v2638_v5 = vsub.f32 %v961_v35, %v2587_v6  ;;  %v2641_v60 = vsub.f32 %v966_v56, %v2587_v6  ;;  %v2644_v42 = vsub.f32 %v971_v2, %v2587_v6  ;;  %v2648_v31 = vsub.f32 %v2355_v14, %v2587_v6 }
 0x188   : > { %3713 = vst [vmem:[#allocation24_spill] sm:$0xff] %v2632_v0  ;;  %3714 = vst [vmem:[#allocation25_spill] sm:$0xff] %v2635_v25  ;;  %v2652_v10 = vsub.f32 %v2360_v17, %v2587_v6  ;;  %v2656_v9 = vsub.f32 %v2365_v20, %v2587_v6  ;;  %v2664_v43 = vsub.f32 %v2370_v23, %v2587_v6 }
 0x189   : > { %3715 = vst [vmem:[#allocation26_spill] sm:$0xff] %v2638_v5  ;;  %v1108_v49 = vmul.f32 %v2648_v31, %v2648_v31  ;;  %v2668_v14 = vsub.f32 %v2375_v27, %v2587_v6  ;;  %v2674_v20 = vsub.f32 %v2380_v30, %v2587_v6  ;;  %v2680_v23 = vsub.f32 %v2384_v33, %v2587_v6 }
 0x18a   : > { %v1109_v32 = vmul.f32 %v2652_v10, %v2652_v10  ;;  %v1110_v17 = vmul.f32 %v2656_v9, %v2656_v9  ;;  %v1111_v35 = vmul.f32 %v2664_v43, %v2664_v43  ;;  %v2686_v11 = vsub.f32 %v2390_v37, %v2587_v6 }
 0x18b   : > { %v1112_v27 = vmul.f32 %v2668_v14, %v2668_v14  ;;  %v1113_v30 = vmul.f32 %v2674_v20, %v2674_v20  ;;  %v2692_v7 = vsub.f32 %v2394_v40, %v2587_v6  ;;  %v1114_v33 = vmul.f32 %v2680_v23, %v2680_v23 }
 0x18c   : > { %v1172_v57 = vadd.f32 %v1109_v32, %v1108_v49  ;;  %v2698_v24 = vsub.f32 %v2400_v44, %v2587_v6  ;;  %v1115_v37 = vmul.f32 %v2686_v11, %v2686_v11  ;;  %v2704_v55 = vsub.f32 %v2404_v47, %v2587_v6 }
 0x18d   : > { %v1116_v40 = vmul.f32 %v2692_v7, %v2692_v7  ;;  %v2710_v32 = vsub.f32 %v2410_v51, %v2587_v6 }
 0x18e   : > { %v1173_v41 = vadd.f32 %v1172_v57, %v1110_v17  ;;  %v1117_v44 = vmul.f32 %v2698_v24, %v2698_v24  ;;  %v2716_v57 = vsub.f32 %v2414_v54, %v2587_v6  ;;  %v1118_v47 = vmul.f32 %v2704_v55, %v2704_v55 }
 0x18f   : > { %v1119_v51 = vmul.f32 %v2710_v32, %v2710_v32 }
 0x190   : > { %v1174_v56 = vadd.f32 %v1173_v41, %v1111_v35  ;;  %v2722_v41 = vsub.f32 %v2420_v58, %v2587_v6  ;;  %v1120_v54 = vmul.f32 %v2716_v57, %v2716_v57 }
 0x192   : > { %v1175_v2 = vadd.f32 %v1174_v56, %v1112_v27  ;;  %v2728_v56 = vsub.f32 %v2424_v61, %v2587_v6  ;;  %v1121_v58 = vmul.f32 %v2722_v41, %v2722_v41 }
 0x194   : > { %v1176_v16 = vadd.f32 %v1175_v2, %v1113_v30  ;;  %v2734_v2 = vsub.f32 %v2430_v1, %v2587_v6  ;;  %v1122_v61 = vmul.f32 %v2728_v56, %v2728_v56 }
 0x196   : > { %v1177_v45 = vadd.f32 %v1176_v16, %v1114_v33  ;;  %v2740_v16 = vsub.f32 %v2434_v4, %v2587_v6  ;;  %v1123_v1 = vmul.f32 %v2734_v2, %v2734_v2 }
 0x198   : > { %v1178_v49 = vadd.f32 %v1177_v45, %v1115_v37  ;;  %v2746_v45 = vsub.f32 %v2440_v8, %v2587_v6  ;;  %v1124_v4 = vmul.f32 %v2740_v16, %v2740_v16 }
 0x19a   : > { %v1179_v17 = vadd.f32 %v1178_v49, %v1116_v40  ;;  %v2752_v49 = vsub.f32 %v2444_v13, %v2587_v6  ;;  %v1125_v8 = vmul.f32 %v2746_v45, %v2746_v45 }
 0x19c   : > { %v1180_v35 = vadd.f32 %v1179_v17, %v1117_v44  ;;  %v2758_v17 = vsub.f32 %v2450_v21, %v2587_v6  ;;  %v1126_v13 = vmul.f32 %v2752_v49, %v2752_v49 }
 0x19e   : > { %v1181_v27 = vadd.f32 %v1180_v35, %v1118_v47  ;;  %v2764_v35 = vsub.f32 %v2454_v26, %v2587_v6  ;;  %v1127_v21 = vmul.f32 %v2758_v17, %v2758_v17 }
 0x1a0   : > { %v1182_v30 = vadd.f32 %v1181_v27, %v1119_v51  ;;  %v2770_v27 = vsub.f32 %v2458_v34, %v2587_v6  ;;  %v1128_v26 = vmul.f32 %v2764_v35, %v2764_v35 }
 0x1a2   : > { %v1183_v33 = vadd.f32 %v1182_v30, %v1120_v54  ;;  %v2776_v30 = vsub.f32 %v2462_v39, %v2587_v6  ;;  %v1129_v34 = vmul.f32 %v2770_v27, %v2770_v27 }
 0x1a4   : > { %v1184_v37 = vadd.f32 %v1183_v33, %v1121_v58  ;;  %v2782_v33 = vsub.f32 %v2468_v46, %v2587_v6  ;;  %v1130_v39 = vmul.f32 %v2776_v30, %v2776_v30 }
 0x1a6   : > { %v1185_v40 = vadd.f32 %v1184_v37, %v1122_v61  ;;  %v2788_v37 = vsub.f32 %v2472_v52, %v2587_v6  ;;  %v1131_v46 = vmul.f32 %v2782_v33, %v2782_v33 }
 0x1a8   : > { %v1186_v44 = vadd.f32 %v1185_v40, %v1123_v1  ;;  %v2794_v40 = vsub.f32 %v2476_v59, %v2587_v6  ;;  %v1132_v52 = vmul.f32 %v2788_v37, %v2788_v37 }
 0x1aa   : > { %v1187_v47 = vadd.f32 %v1186_v44, %v1124_v4  ;;  %v2800_v44 = vsub.f32 %v2480_v63, %v2587_v6  ;;  %v1133_v59 = vmul.f32 %v2794_v40, %v2794_v40 }
 0x1ac   : > { %v1188_v51 = vadd.f32 %v1187_v47, %v1125_v8  ;;  %v3716_v47 = vld [vmem:[#allocation6_spill] sm:$0xff]  ;;  %v1134_v63 = vmul.f32 %v2800_v44, %v2800_v44 }
 0x1ae   : > { %v1189_v54 = vadd.f32 %v1188_v51, %v1126_v13  ;;  %v2806_v13 = vsub.f32 %v3716_v47, %v2587_v6 }
 0x1b0   : > { %v1190_v58 = vadd.f32 %v1189_v54, %v1127_v21  ;;  %v3717_v21 = vld [vmem:[#allocation7_spill] sm:$0xff] }
 0x1b1   : > { %v2812_v54 = vsub.f32 %v3717_v21, %v2587_v6  ;;  %v3725_v21 = vld [vmem:[#allocation11_spill] sm:$0xff] }
 0x1b2   : > { %v1191_v61 = vadd.f32 %v1190_v58, %v1128_v26  ;;  %v3719_v58 = vld [vmem:[#allocation8_spill] sm:$0xff] }
 0x1b3   : > { %3718 = vst [vmem:[#allocation6_spill] sm:$0xff] %v2812_v54 }
 0x1b4   : > { %v1192_v1 = vadd.f32 %v1191_v61, %v1129_v34  ;;  %v2818_v34 = vsub.f32 %v3719_v58, %v2587_v6  ;;  %v1135_v61 = vmul.f32 %v2806_v13, %v2806_v13  ;;  %v2836_v58 = vsub.f32 %v3725_v21, %v2587_v6  ;;  %v3731_v21 = vld [vmem:[#allocation14_spill] sm:$0xff] }
 0x1b6   : > { %v1193_v4 = vadd.f32 %v1192_v1, %v1130_v39  ;;  %3720 = vst [vmem:[#allocation7_spill] sm:$0xff] %v2818_v34  ;;  %v3721_v1 = vld [vmem:[#allocation9_spill] sm:$0xff] }
 0x1b8   : > { %v1194_v8 = vadd.f32 %v1193_v4, %v1131_v46  ;;  %v2824_v46 = vsub.f32 %v3721_v1, %v2587_v6  ;;  %v1136_v4 = vmul.f32 %v2812_v54, %v2812_v54  ;;  %v3727_v1 = vld [vmem:[#allocation12_spill] sm:$0xff] }
 0x1b9   : > { %v2842_v54 = vsub.f32 %v3727_v1, %v2587_v6  ;;  %v3733_v1 = vld [vmem:[#allocation15_spill] sm:$0xff] }
 0x1ba   : > { %v1195_v51 = vadd.f32 %v1194_v8, %v1132_v52  ;;  %3722 = vst [vmem:[#allocation8_spill] sm:$0xff] %v2824_v46  ;;  %v3723_v8 = vld [vmem:[#allocation10_spill] sm:$0xff] }
 0x1bb   : > { %v2830_v47 = vsub.f32 %v3723_v8, %v2587_v6  ;;  %3726 = vst [vmem:[#allocation10_spill] sm:$0xff] %v2836_v58  ;;  %3728 = vst [vmem:[#allocation11_spill] sm:$0xff] %v2842_v54  ;;  %v3729_v8 = vld [vmem:[#allocation13_spill] sm:$0xff] }
 0x1bc   : > { %v1196_v26 = vadd.f32 %v1195_v51, %v1133_v59  ;;  %v1137_v59 = vmul.f32 %v2818_v34, %v2818_v34  ;;  %v2848_v34 = vsub.f32 %v3729_v8, %v2587_v6  ;;  %v3735_v8 = vld [vmem:[#allocation16_spill] sm:$0xff] }
 0x1bd   : > { %3724 = vst [vmem:[#allocation9_spill] sm:$0xff] %v2830_v47 }
 0x1be   : > { %v1197_v39 = vadd.f32 %v1196_v26, %v1134_v63  ;;  %v1138_v63 = vmul.f32 %v2824_v46, %v2824_v46  ;;  %3730 = vst [vmem:[#allocation12_spill] sm:$0xff] %v2848_v34  ;;  %v2854_v46 = vsub.f32 %v3731_v21, %v2587_v6  ;;  %v3737_v21 = vld [vmem:[#allocation17_spill] sm:$0xff] }
 0x1c0   : > { %v1198_v52 = vadd.f32 %v1197_v39, %v1135_v61  ;;  %v1139_v61 = vmul.f32 %v2830_v47, %v2830_v47  ;;  %3732 = vst [vmem:[#allocation13_spill] sm:$0xff] %v2854_v46  ;;  %v2860_v47 = vsub.f32 %v3733_v1, %v2587_v6  ;;  %v3739_v1 = vld [vmem:[#allocation18_spill] sm:$0xff] }
 0x1c2   : > { %v1199_v51 = vadd.f32 %v1198_v52, %v1136_v4  ;;  %v1140_v4 = vmul.f32 %v2836_v58, %v2836_v58  ;;  %3734 = vst [vmem:[#allocation14_spill] sm:$0xff] %v2860_v47  ;;  %v2866_v58 = vsub.f32 %v3735_v8, %v2587_v6  ;;  %v3741_v8 = vld [vmem:[#allocation19_spill] sm:$0xff] }
 0x1c4   : > { %v1200_v26 = vadd.f32 %v1199_v51, %v1137_v59  ;;  %v1141_v59 = vmul.f32 %v2842_v54, %v2842_v54  ;;  %3736 = vst [vmem:[#allocation15_spill] sm:$0xff] %v2866_v58  ;;  %v2872_v54 = vsub.f32 %v3737_v21, %v2587_v6  ;;  %v3742_v21 = vld [vmem:[#allocation20_spill] sm:$0xff] }
 0x1c6   : > { %v1201_v39 = vadd.f32 %v1200_v26, %v1138_v63  ;;  %v1142_v63 = vmul.f32 %v2848_v34, %v2848_v34  ;;  %3738 = vst [vmem:[#allocation16_spill] sm:$0xff] %v2872_v54  ;;  %v2878_v34 = vsub.f32 %v3739_v1, %v2587_v6  ;;  %v3744_v1 = vld [vmem:[#allocation21_spill] sm:$0xff] }
 0x1c8   : > { %v1202_v52 = vadd.f32 %v1201_v39, %v1139_v61  ;;  %v1143_v61 = vmul.f32 %v2854_v46, %v2854_v46  ;;  %3740 = vst [vmem:[#allocation17_spill] sm:$0xff] %v2878_v34  ;;  %v2884_v46 = vsub.f32 %v3741_v8, %v2587_v6  ;;  %v3745_v8 = vld [vmem:[#allocation22_spill] sm:$0xff] }
 0x1ca   : > { %v1203_v51 = vadd.f32 %v1202_v52, %v1140_v4  ;;  %v1144_v4 = vmul.f32 %v2860_v47, %v2860_v47  ;;  %v2890_v47 = vsub.f32 %v3742_v21, %v2587_v6  ;;  %v3746_v21 = vld [vmem:[#allocation23_spill] sm:$0xff] }
 0x1cc   : > { %v1204_v26 = vadd.f32 %v1203_v51, %v1141_v59  ;;  %v1145_v59 = vmul.f32 %v2866_v58, %v2866_v58  ;;  %3743 = vst [vmem:[#allocation18_spill] sm:$0xff] %v2890_v47  ;;  %v2896_v58 = vsub.f32 %v3744_v1, %v2587_v6 }
 0x1ce   : > { %v1205_v39 = vadd.f32 %v1204_v26, %v1142_v63  ;;  %v1146_v63 = vmul.f32 %v2872_v54, %v2872_v54  ;;  %v2902_v54 = vsub.f32 %v3745_v8, %v2587_v6 }
 0x1d0   : > { %v1206_v52 = vadd.f32 %v1205_v39, %v1143_v61  ;;  %v1147_v61 = vmul.f32 %v2878_v34, %v2878_v34  ;;  %v2908_v34 = vsub.f32 %v3746_v21, %v2587_v6  ;;  %v1151_v1 = vmul.f32 %v2902_v54, %v2902_v54 }
 0x1d1   : > { %v1154_v6 = vmul.f32 %v2593_v3, %v2593_v3  ;;  %v1155_v21 = vmul.f32 %v2596_v48, %v2596_v48 }
 0x1d2   : > { %v1207_v51 = vadd.f32 %v1206_v52, %v1144_v4  ;;  %v1148_v4 = vmul.f32 %v2884_v46, %v2884_v46 }
 0x1d4   : > { %v1208_v26 = vadd.f32 %v1207_v51, %v1145_v59  ;;  %v1149_v59 = vmul.f32 %v2890_v47, %v2890_v47  ;;  %v1153_v47 = vmul.f32 %v2590_v62, %v2590_v62 }
 0x1d6   : > { %v1209_v39 = vadd.f32 %v1208_v26, %v1146_v63  ;;  %v1150_v63 = vmul.f32 %v2896_v58, %v2896_v58 }
 0x1d8   : > { %v1210_v52 = vadd.f32 %v1209_v39, %v1147_v61  ;;  %v1152_v39 = vmul.f32 %v2908_v34, %v2908_v34 }
 0x1da   : > { %v1211_v51 = vadd.f32 %v1210_v52, %v1148_v4 }
 0x1dc   : > { %v1212_v26 = vadd.f32 %v1211_v51, %v1149_v59  ;;  %v1156_v51 = vmul.f32 %v2599_v12, %v2599_v12 }
 0x1de   : > { %v1213_v61 = vadd.f32 %v1212_v26, %v1150_v63  ;;  %v1157_v26 = vmul.f32 %v2602_v38, %v2602_v38 }
 0x1e0   : > { %v1214_v8 = vadd.f32 %v1213_v61, %v1151_v1  ;;  %v1158_v61 = vmul.f32 %v2605_v28, %v2605_v28 }
 0x1e2   : > { %v1215_v4 = vadd.f32 %v1214_v8, %v1152_v39  ;;  %v1159_v8 = vmul.f32 %v2608_v15, %v2608_v15 }
 0x1e4   : > { %v1216_v52 = vadd.f32 %v1215_v4, %v1153_v47  ;;  %v1160_v4 = vmul.f32 %v2611_v53, %v2611_v53 }
 0x1e6   : > { %v1217_v59 = vadd.f32 %v1216_v52, %v1154_v6  ;;  %v1161_v52 = vmul.f32 %v2614_v36, %v2614_v36 }
 0x1e8   : > { %v1218_v63 = vadd.f32 %v1217_v59, %v1155_v21  ;;  %v1162_v59 = vmul.f32 %v2617_v18, %v2617_v18 }
 0x1ea   : > { %v1219_v1 = vadd.f32 %v1218_v63, %v1156_v51  ;;  %v1163_v63 = vmul.f32 %v2620_v19, %v2620_v19 }
 0x1ec   : > { %v1220_v39 = vadd.f32 %v1219_v1, %v1157_v26  ;;  %v1164_v1 = vmul.f32 %v2623_v29, %v2623_v29 }
 0x1ee   : > { %v1221_v47 = vadd.f32 %v1220_v39, %v1158_v61  ;;  %v1165_v39 = vmul.f32 %v2626_v22, %v2626_v22 }
 0x1f0   : > { %v1222_v6 = vadd.f32 %v1221_v47, %v1159_v8  ;;  %v1166_v47 = vmul.f32 %v2629_v50, %v2629_v50 }
 0x1f2   : > { %v1223_v21 = vadd.f32 %v1222_v6, %v1160_v4  ;;  %v1167_v6 = vmul.f32 %v2632_v0, %v2632_v0 }
 0x1f4   : > { %v1224_v51 = vadd.f32 %v1223_v21, %v1161_v52  ;;  %v1168_v21 = vmul.f32 %v2635_v25, %v2635_v25 }
 0x1f6   : > { %v1225_v26 = vadd.f32 %v1224_v51, %v1162_v59  ;;  %v1169_v51 = vmul.f32 %v2638_v5, %v2638_v5 }
 0x1f8   : > { %v1226_v61 = vadd.f32 %v1225_v26, %v1163_v63  ;;  %v1170_v26 = vmul.f32 %v2641_v60, %v2641_v60 }
 0x1fa   : > { %v1227_v8 = vadd.f32 %v1226_v61, %v1164_v1  ;;  %v1171_v61 = vmul.f32 %v2644_v42, %v2644_v42 }
 0x1fc   : > { %v1228_v4 = vadd.f32 %v1227_v8, %v1165_v39 }
 0x1fe   : > { %v1229_v52 = vadd.f32 %v1228_v4, %v1166_v47 }
 0x200   : > { %v1230_v59 = vadd.f32 %v1229_v52, %v1167_v6 }
 0x202   : > { %v1231_v63 = vadd.f32 %v1230_v59, %v1168_v21  ;;  %v1246_v59 = vlaneseq }
 0x204   : > { %v1232_v1 = vadd.f32 %v1231_v63, %v1169_v51  ;;  %v1247_v51 = vshrl.u32 %v1246_v59, 7  ;;  %v1244_v63 = vld [vmem:[%s312_s14] sm:$0x1]  ;;  %v3748_v59 = vld [vmem:[#allocation7_spill] sm:$0xff] }
 0x206   : > { %v1233_v39 = vadd.f32 %v1232_v1, %v1170_v26  ;;  %v1248_v26 = vsub.s32 0, %v1247_v51  ;;  %v3749_v51 = vld [vmem:[#allocation8_spill] sm:$0xff] }
 0x208   : > { %v1234_v8 = vadd.f32 %v1233_v39, %v1171_v61 }
 0x20a   : > { %v1235_v47 = vrot.slane %v1234_v8, 4 }
 0x20c   : > { %v1236_v4 = vadd.f32 %v1235_v47, %v1234_v8 }
 0x20e   : > { %v1237_v0 = vrot.slane %v1236_v4, 2 }
 0x210   : > { %v1238_v25 = vadd.f32 %v1237_v0, %v1236_v4 }
 0x212   : > { %v1239_v6 = vrot.slane %v1238_v25, 1 }
 0x214   : > { %v1240_v52 = vadd.f32 %v1239_v6, %v1238_v25  ;;  %v2964_v25 = vld [vmem:[%s315_s17] ss:$0 sm:$0xff] }
 0x216   : > { %v1241_v5 = vmul.f32 0.001953125, %v1240_v52 }
 0x218   : > { %v1242_v21 = vadd.f32 1e-05, %v1241_v5 }
 0x21a   : > { %1927 = vrsqrt.f32 %v1242_v21  ;;  %v3747_v21 = vld [vmem:[#allocation6_spill] sm:$0xff] }
 0x227   : > { %v1928_v1 = vpop.eup %1927 }
 0x228   : > { %v1245_v0 = vmul.f32 %v1928_v1, %v1244_v63  ;;  %v3750_v63 = vld [vmem:[#allocation9_spill] sm:$0xff]  ;;  %v3753_v1 = vld [vmem:[#allocation11_spill] sm:$0xff] }
 0x22a   : > { %v2962_v61 = vrot.slane %v1245_v0, %v1248_v26  ;;  %v3751_v26 = vld [vmem:[#allocation10_spill] sm:$0xff] }
 0x22c   : > { %v1312_v5 = vmul.f32 %v2962_v61, %v2641_v60  ;;  %v2971_v39 = vmul.f32 %v2962_v61, %v2648_v31  ;;  %v2975_v8 = vmul.f32 %v2962_v61, %v2652_v10  ;;  %v2979_v47 = vmul.f32 %v2962_v61, %v2656_v9 }
 0x22d   : > { %v2983_v4 = vmul.f32 %v2962_v61, %v2664_v43  ;;  %v2987_v6 = vmul.f32 %v2962_v61, %v2668_v14  ;;  %v2991_v60 = vmul.f32 %v2962_v61, %v2674_v20  ;;  %v2995_v31 = vmul.f32 %v2962_v61, %v2680_v23 }
 0x22e   : > { %v1383_v10 = vadd.f32 %v2964_v25, %v1312_v5  ;;  %v3000_v9 = vmul.f32 %v2962_v61, %v2686_v11  ;;  %v3004_v43 = vmul.f32 %v2962_v61, %v2692_v7  ;;  %v3008_v14 = vmul.f32 %v2962_v61, %v2698_v24  ;;  %v3755_v5 = vld [vmem:[#allocation12_spill] sm:$0xff] }
 0x22f   : > { %v3012_v20 = vmul.f32 %v2962_v61, %v2704_v55  ;;  %v3016_v23 = vmul.f32 %v2962_v61, %v2710_v32  ;;  %v3020_v11 = vmul.f32 %v2962_v61, %v2716_v57  ;;  %v3024_v7 = vmul.f32 %v2962_v61, %v2722_v41 }
 0x230   : > { %v1447_v52 = vmax.f32 %v1383_v10, 0.0  ;;  %v3028_v24 = vmul.f32 %v2962_v61, %v2728_v56  ;;  %v3032_v55 = vmul.f32 %v2962_v61, %v2734_v2  ;;  %v3036_v32 = vmul.f32 %v2962_v61, %v2740_v16 }
 0x231   : > { %v3040_v57 = vmul.f32 %v2962_v61, %v2746_v45  ;;  %v3044_v41 = vmul.f32 %v2962_v61, %v2752_v49  ;;  %v3048_v56 = vmul.f32 %v2962_v61, %v2758_v17  ;;  %v3052_v2 = vmul.f32 %v2962_v61, %v2764_v35 }
 0x232   : > { %1511 = vst [vmem:[%s3054_s25 + $0x1f0] sm:$0xff] %v1447_v52  ;;  %v3059_v16 = vmul.f32 %v2962_v61, %v2770_v27  ;;  %v3063_v45 = vmul.f32 %v2962_v61, %v2776_v30  ;;  %v3067_v49 = vmul.f32 %v2962_v61, %v2782_v33  ;;  %v3071_v17 = vmul.f32 %v2962_v61, %v2788_v37  ;;  %v3756_v52 = vld [vmem:[#allocation13_spill] sm:$0xff] }
 0x233   : > { %v3075_v35 = vmul.f32 %v2962_v61, %v2794_v40  ;;  %v3079_v27 = vmul.f32 %v2962_v61, %v2800_v44  ;;  %v3083_v30 = vmul.f32 %v2962_v61, %v2806_v13  ;;  %v3087_v33 = vmul.f32 %v2962_v61, %v3747_v21 }
 0x234   : > { %v3091_v37 = vmul.f32 %v2962_v61, %v3748_v59  ;;  %v3095_v40 = vmul.f32 %v2962_v61, %v3749_v51  ;;  %v3099_v44 = vmul.f32 %v2962_v61, %v3750_v63  ;;  %v3103_v13 = vmul.f32 %v2962_v61, %v3751_v26  ;;  %v3758_v59 = vld [vmem:[#allocation14_spill] sm:$0xff]  ;;  %v3759_v63 = vld [vmem:[#allocation15_spill] sm:$0xff] }
 0x235   : > { %v3107_v0 = vmul.f32 %v2962_v61, %v3753_v1  ;;  %v3111_v10 = vmul.f32 %v2962_v61, %v3755_v5  ;;  %v3115_v21 = vmul.f32 %v2962_v61, %v3756_v52  ;;  %v3119_v51 = vmul.f32 %v2962_v61, %v3758_v59 }
 0x236   : > { %3752 = vst [vmem:[#allocation19_spill] sm:$0xff] %v3103_v13  ;;  %v3123_v26 = vmul.f32 %v2962_v61, %v3759_v63  ;;  %v3760_v13 = vld [vmem:[#allocation16_spill] sm:$0xff]  ;;  %v3135_v52 = vmul.f32 %v2962_v61, %v2884_v46  ;;  %v3143_v63 = vmul.f32 %v2962_v61, %v2896_v58  ;;  %v3155_v46 = vmul.f32 %v2962_v61, %v2590_v62 }
 0x237   : > { %3754 = vst [vmem:[#allocation20_spill] sm:$0xff] %v3107_v0  ;;  %3757 = vst [vmem:[#allocation21_spill] sm:$0xff] %v3115_v21  ;;  %v3127_v1 = vmul.f32 %v2962_v61, %v3760_v13  ;;  %v3761_v0 = vld [vmem:[#allocation17_spill] sm:$0xff]  ;;  %v3762_v21 = vld [vmem:[#allocation18_spill] sm:$0xff]  ;;  %v3147_v13 = vmul.f32 %v2962_v61, %v2902_v54  ;;  %v3163_v58 = vmul.f32 %v2962_v61, %v2596_v48 }
 0x238   : > { %v3131_v5 = vmul.f32 %v2962_v61, %v3761_v0  ;;  %v3139_v59 = vmul.f32 %v2962_v61, %v3762_v21  ;;  %v3151_v0 = vmul.f32 %v2962_v61, %v2908_v34  ;;  %v3159_v21 = vmul.f32 %v2962_v61, %v2593_v3 }
 0x239   : > { %v3167_v54 = vmul.f32 %v2962_v61, %v2599_v12  ;;  %v3171_v34 = vmul.f32 %v2962_v61, %v2602_v38  ;;  %v3175_v62 = vmul.f32 %v2962_v61, %v2605_v28  ;;  %v3179_v3 = vmul.f32 %v2962_v61, %v2608_v15 }
 0x23a   : > { %v3183_v48 = vmul.f32 %v2962_v61, %v2611_v53  ;;  %v3187_v12 = vmul.f32 %v2962_v61, %v2614_v36  ;;  %v3191_v38 = vmul.f32 %v2962_v61, %v2617_v18  ;;  %v3195_v28 = vmul.f32 %v2962_v61, %v2620_v19 }
 0x23b   : > { %v3199_v15 = vmul.f32 %v2962_v61, %v2623_v29  ;;  %v3203_v53 = vmul.f32 %v2962_v61, %v2626_v22  ;;  %v3207_v36 = vmul.f32 %v2962_v61, %v2629_v50  ;;  %v3223_v22 = vmul.f32 %v2962_v61, %v2644_v42 }
 0x23c   : > { %3763 = vst [vmem:[#allocation22_spill] sm:$0xff] %v3187_v12  ;;  %3764 = vst [vmem:[#allocation23_spill] sm:$0xff] %v3191_v38  ;;  %v3766_v12 = vld [vmem:[#allocation24_spill] sm:$0xff]  ;;  %v3767_v38 = vld [vmem:[#allocation25_spill] sm:$0xff]  ;;  %v3227_v50 = vadd.f32 %v2964_v25, %v2971_v39  ;;  %v3243_v42 = vadd.f32 %v2964_v25, %v2987_v6  ;;  %v3251_v39 = vadd.f32 %v2964_v25, %v2995_v31 }
 0x23d   : > { %3765 = vst [vmem:[#allocation6_spill] sm:$0xff] %v3195_v28  ;;  %v3211_v18 = vmul.f32 %v2962_v61, %v3766_v12  ;;  %v3215_v19 = vmul.f32 %v2962_v61, %v3767_v38  ;;  %v3768_v28 = vld [vmem:[#allocation26_spill] sm:$0xff]  ;;  %v3231_v12 = vadd.f32 %v2964_v25, %v2975_v8  ;;  %v3235_v38 = vadd.f32 %v2964_v25, %v2979_v47 }
 0x23e   : > { %v3219_v29 = vmul.f32 %v2962_v61, %v3768_v28  ;;  %v3239_v28 = vadd.f32 %v2964_v25, %v2983_v4  ;;  %v3247_v61 = vadd.f32 %v2964_v25, %v2991_v60  ;;  %v3255_v8 = vadd.f32 %v2964_v25, %v3000_v9 }
 0x23f   : > { %v3259_v47 = vadd.f32 %v2964_v25, %v3004_v43  ;;  %v3263_v4 = vadd.f32 %v2964_v25, %v3008_v14  ;;  %v3267_v6 = vadd.f32 %v2964_v25, %v3012_v20  ;;  %v3271_v60 = vadd.f32 %v2964_v25, %v3016_v23 }
 0x240   : > { %v3275_v31 = vadd.f32 %v2964_v25, %v3020_v11  ;;  %v3279_v9 = vadd.f32 %v2964_v25, %v3024_v7  ;;  %v3283_v43 = vadd.f32 %v2964_v25, %v3028_v24  ;;  %v3287_v14 = vadd.f32 %v2964_v25, %v3032_v55 }
 0x241   : > { %v3291_v20 = vadd.f32 %v2964_v25, %v3036_v32  ;;  %v3295_v23 = vadd.f32 %v2964_v25, %v3040_v57  ;;  %v3299_v11 = vadd.f32 %v2964_v25, %v3044_v41  ;;  %v3303_v7 = vadd.f32 %v2964_v25, %v3048_v56 }
 0x242   : > { %v3307_v24 = vadd.f32 %v2964_v25, %v3052_v2  ;;  %v3311_v55 = vadd.f32 %v2964_v25, %v3059_v16  ;;  %v3315_v32 = vadd.f32 %v2964_v25, %v3063_v45  ;;  %v3319_v57 = vadd.f32 %v2964_v25, %v3067_v49 }
 0x243   : > { %v3323_v41 = vadd.f32 %v2964_v25, %v3071_v17  ;;  %v3327_v56 = vadd.f32 %v2964_v25, %v3075_v35  ;;  %v3331_v2 = vadd.f32 %v2964_v25, %v3079_v27  ;;  %v3335_v16 = vadd.f32 %v2964_v25, %v3083_v30  ;;  %v3771_v27 = vld [vmem:[#allocation19_spill] sm:$0xff] }
 0x244   : > { %v3339_v45 = vadd.f32 %v2964_v25, %v3087_v33  ;;  %v3343_v49 = vadd.f32 %v2964_v25, %v3091_v37  ;;  %v3347_v17 = vadd.f32 %v2964_v25, %v3095_v40  ;;  %v3351_v35 = vadd.f32 %v2964_v25, %v3099_v44 }
 0x245   : > { %3769 = vst [vmem:[#allocation7_spill] sm:$0xff] %v3335_v16  ;;  %v3355_v30 = vadd.f32 %v2964_v25, %v3771_v27  ;;  %v3772_v16 = vld [vmem:[#allocation20_spill] sm:$0xff]  ;;  %v3363_v37 = vadd.f32 %v2964_v25, %v3111_v10  ;;  %v3371_v44 = vadd.f32 %v2964_v25, %v3119_v51  ;;  %v3375_v27 = vadd.f32 %v2964_v25, %v3123_v26 }
 0x246   : > { %3770 = vst [vmem:[#allocation8_spill] sm:$0xff] %v3343_v49  ;;  %v3359_v33 = vadd.f32 %v2964_v25, %v3772_v16  ;;  %v3773_v49 = vld [vmem:[#allocation21_spill] sm:$0xff]  ;;  %v3379_v16 = vadd.f32 %v2964_v25, %v3127_v1  ;;  %v3383_v10 = vadd.f32 %v2964_v25, %v3131_v5  ;;  %v3391_v51 = vadd.f32 %v2964_v25, %v3139_v59 }
 0x247   : > { %v3367_v40 = vadd.f32 %v2964_v25, %v3773_v49  ;;  %v3387_v49 = vadd.f32 %v2964_v25, %v3135_v52  ;;  %v3395_v26 = vadd.f32 %v2964_v25, %v3143_v63  ;;  %v3399_v1 = vadd.f32 %v2964_v25, %v3147_v13 }
 0x248   : > { %v3403_v5 = vadd.f32 %v2964_v25, %v3151_v0  ;;  %v3407_v52 = vadd.f32 %v2964_v25, %v3155_v46  ;;  %v3411_v59 = vadd.f32 %v2964_v25, %v3159_v21  ;;  %v3415_v63 = vadd.f32 %v2964_v25, %v3163_v58 }
 0x249   : > { %v3419_v13 = vadd.f32 %v2964_v25, %v3167_v54  ;;  %v3423_v0 = vadd.f32 %v2964_v25, %v3171_v34  ;;  %v3427_v46 = vadd.f32 %v2964_v25, %v3175_v62  ;;  %v3431_v21 = vadd.f32 %v2964_v25, %v3179_v3 }
 0x24a   : > { %3774 = vst [vmem:[#allocation9_spill] sm:$0xff] %v3415_v63  ;;  %v3435_v58 = vadd.f32 %v2964_v25, %v3183_v48  ;;  %v3777_v63 = vld [vmem:[#allocation22_spill] sm:$0xff]  ;;  %v3451_v3 = vadd.f32 %v2964_v25, %v3199_v15  ;;  %v3455_v48 = vadd.f32 %v2964_v25, %v3203_v53  ;;  %v3471_v15 = vadd.f32 %v2964_v25, %v3219_v29 }
 0x24b   : > { %3775 = vst [vmem:[#allocation10_spill] sm:$0xff] %v3419_v13  ;;  %3776 = vst [vmem:[#allocation11_spill] sm:$0xff] %v3423_v0  ;;  %v3439_v54 = vadd.f32 %v2964_v25, %v3777_v63  ;;  %v3778_v13 = vld [vmem:[#allocation23_spill] sm:$0xff]  ;;  %v3779_v0 = vld [vmem:[#allocation6_spill] sm:$0xff]  ;;  %v3459_v63 = vadd.f32 %v2964_v25, %v3207_v36  ;;  %v3475_v53 = vadd.f32 %v2964_v25, %v3223_v22  ;;  %v1385_v36 = vmax.f32 %v3227_v50, 0.0 }
 0x24c   : > { %v3443_v34 = vadd.f32 %v2964_v25, %v3778_v13  ;;  %v3447_v62 = vadd.f32 %v2964_v25, %v3779_v0  ;;  %v3463_v13 = vadd.f32 %v2964_v25, %v3211_v18  ;;  %v3467_v0 = vadd.f32 %v2964_v25, %v3215_v19  ;;  %3782 = vst [vmem:[#allocation14_spill] sm:$0xff] %v3471_v15 }
 0x24d   : > { %3780 = vst [vmem:[#allocation12_spill] sm:$0xff] %v3459_v63  ;;  %v1386_v63 = vmax.f32 %v3231_v12, 0.0  ;;  %v1387_v18 = vmax.f32 %v3235_v38, 0.0  ;;  %v1389_v19 = vmax.f32 %v3243_v42, 0.0  ;;  %v1390_v29 = vmax.f32 %v3247_v61, 0.0  ;;  %1449 = vst [vmem:[%s3054_s25] sm:$0xff] %v1385_v36 }
 0x24e   : > { %3781 = vst [vmem:[#allocation13_spill] sm:$0xff] %v3463_v13  ;;  %v1388_v13 = vmax.f32 %v3239_v28, 0.0  ;;  %v1391_v15 = vmax.f32 %v3251_v39, 0.0  ;;  %v1392_v25 = vmax.f32 %v3255_v8, 0.0  ;;  %v1393_v22 = vmax.f32 %v3259_v47, 0.0 }
 0x24f   : > { %v1394_v50 = vmax.f32 %v3263_v4, 0.0  ;;  %v1395_v12 = vmax.f32 %v3267_v6, 0.0  ;;  %1450 = vst [vmem:[%s3054_s25 + $0x8] sm:$0xff] %v1386_v63  ;;  %1451 = vst [vmem:[%s3054_s25 + $0x10] sm:$0xff] %v1387_v18  ;;  %v1396_v38 = vmax.f32 %v3271_v60, 0.0  ;;  %v1397_v28 = vmax.f32 %v3275_v31, 0.0 }
 0x250   : > { %v1398_v42 = vmax.f32 %v3279_v9, 0.0  ;;  %v1399_v61 = vmax.f32 %v3283_v43, 0.0  ;;  %1452 = vst [vmem:[%s3054_s25 + $0x18] sm:$0xff] %v1388_v13  ;;  %1453 = vst [vmem:[%s3054_s25 + $0x20] sm:$0xff] %v1389_v19  ;;  %v1400_v39 = vmax.f32 %v3287_v14, 0.0  ;;  %v1401_v8 = vmax.f32 %v3291_v20, 0.0 }
 0x251   : > { %1454 = vst [vmem:[%s3054_s25 + $0x28] sm:$0xff] %v1390_v29  ;;  %1455 = vst [vmem:[%s3054_s25 + $0x30] sm:$0xff] %v1391_v15  ;;  %v1402_v47 = vmax.f32 %v3295_v23, 0.0  ;;  %v1403_v4 = vmax.f32 %v3299_v11, 0.0  ;;  %v1404_v6 = vmax.f32 %v3303_v7, 0.0  ;;  %v1405_v60 = vmax.f32 %v3307_v24, 0.0 }
 0x252   : > { %1456 = vst [vmem:[%s3054_s25 + $0x38] sm:$0xff] %v1392_v25  ;;  %1457 = vst [vmem:[%s3054_s25 + $0x40] sm:$0xff] %v1393_v22  ;;  %v1406_v31 = vmax.f32 %v3311_v55, 0.0  ;;  %v1407_v9 = vmax.f32 %v3315_v32, 0.0  ;;  %v1408_v43 = vmax.f32 %v3319_v57, 0.0  ;;  %v1409_v14 = vmax.f32 %v3323_v41, 0.0 }
 0x253   : > { %1458 = vst [vmem:[%s3054_s25 + $0x48] sm:$0xff] %v1394_v50  ;;  %1459 = vst [vmem:[%s3054_s25 + $0x50] sm:$0xff] %v1395_v12  ;;  %v1410_v20 = vmax.f32 %v3327_v56, 0.0  ;;  %v1411_v23 = vmax.f32 %v3331_v2, 0.0  ;;  %v3783_v11 = vld [vmem:[#allocation7_spill] sm:$0xff]  ;;  %v1413_v24 = vmax.f32 %v3339_v45, 0.0 }
 0x254   : > { %1460 = vst [vmem:[%s3054_s25 + $0x58] sm:$0xff] %v1396_v38  ;;  %1461 = vst [vmem:[%s3054_s25 + $0x60] sm:$0xff] %v1397_v28  ;;  %v1412_v7 = vmax.f32 %v3783_v11, 0.0  ;;  %v3784_v55 = vld [vmem:[#allocation8_spill] sm:$0xff]  ;;  %v1415_v57 = vmax.f32 %v3347_v17, 0.0  ;;  %v1416_v41 = vmax.f32 %v3351_v35, 0.0 }
 0x255   : > { %1462 = vst [vmem:[%s3054_s25 + $0x68] sm:$0xff] %v1398_v42  ;;  %1463 = vst [vmem:[%s3054_s25 + $0x70] sm:$0xff] %v1399_v61  ;;  %v1414_v32 = vmax.f32 %v3784_v55, 0.0  ;;  %v1417_v56 = vmax.f32 %v3355_v30, 0.0  ;;  %v1418_v2 = vmax.f32 %v3359_v33, 0.0  ;;  %v1419_v45 = vmax.f32 %v3363_v37, 0.0 }
 0x256   : > { %1464 = vst [vmem:[%s3054_s25 + $0x78] sm:$0xff] %v1400_v39  ;;  %1465 = vst [vmem:[%s3054_s25 + $0x80] sm:$0xff] %v1401_v8  ;;  %v1420_v17 = vmax.f32 %v3367_v40, 0.0  ;;  %v1421_v63 = vmax.f32 %v3371_v44, 0.0  ;;  %v1422_v35 = vmax.f32 %v3375_v27, 0.0  ;;  %v1423_v30 = vmax.f32 %v3379_v16, 0.0 }
 0x257   : > { %1466 = vst [vmem:[%s3054_s25 + $0x88] sm:$0xff] %v1402_v47  ;;  %1467 = vst [vmem:[%s3054_s25 + $0x90] sm:$0xff] %v1403_v4  ;;  %v1424_v33 = vmax.f32 %v3383_v10, 0.0  ;;  %v1425_v37 = vmax.f32 %v3387_v49, 0.0  ;;  %v1426_v40 = vmax.f32 %v3391_v51, 0.0  ;;  %v1427_v44 = vmax.f32 %v3395_v26, 0.0 }
 0x258   : > { %1468 = vst [vmem:[%s3054_s25 + $0x98] sm:$0xff] %v1404_v6  ;;  %1469 = vst [vmem:[%s3054_s25 + $0xa0] sm:$0xff] %v1405_v60  ;;  %v1428_v27 = vmax.f32 %v3399_v1, 0.0  ;;  %v1429_v16 = vmax.f32 %v3403_v5, 0.0  ;;  %v1430_v10 = vmax.f32 %v3407_v52, 0.0  ;;  %v1431_v49 = vmax.f32 %v3411_v59, 0.0 }
 0x259   : > { %1470 = vst [vmem:[%s3054_s25 + $0xa8] sm:$0xff] %v1406_v31  ;;  %1471 = vst [vmem:[%s3054_s25 + $0xb0] sm:$0xff] %v1407_v9  ;;  %v3785_v51 = vld [vmem:[#allocation9_spill] sm:$0xff]  ;;  %v3786_v13 = vld [vmem:[#allocation10_spill] sm:$0xff]  ;;  %v1435_v5 = vmax.f32 %v3427_v46, 0.0  ;;  %v1436_v52 = vmax.f32 %v3431_v21, 0.0 }
 0x25a   : > { %1472 = vst [vmem:[%s3054_s25 + $0xb8] sm:$0xff] %v1408_v43  ;;  %1473 = vst [vmem:[%s3054_s25 + $0xc0] sm:$0xff] %v1409_v14  ;;  %v1432_v26 = vmax.f32 %v3785_v51, 0.0  ;;  %v1433_v1 = vmax.f32 %v3786_v13, 0.0  ;;  %v3787_v15 = vld [vmem:[#allocation11_spill] sm:$0xff]  ;;  %v1437_v59 = vmax.f32 %v3435_v58, 0.0 }
 0x25b   : > { %1474 = vst [vmem:[%s3054_s25 + $0xc8] sm:$0xff] %v1410_v20  ;;  %1475 = vst [vmem:[%s3054_s25 + $0xd0] sm:$0xff] %v1411_v23  ;;  %v1434_v36 = vmax.f32 %v3787_v15, 0.0  ;;  %v1438_v18 = vmax.f32 %v3439_v54, 0.0  ;;  %v1439_v19 = vmax.f32 %v3443_v34, 0.0  ;;  %v1440_v46 = vmax.f32 %v3447_v62, 0.0 }
 0x25c   : > { %1476 = vst [vmem:[%s3054_s25 + $0xd8] sm:$0xff] %v1412_v7  ;;  %1477 = vst [vmem:[%s3054_s25 + $0xe0] sm:$0xff] %v1413_v24  ;;  %v1441_v21 = vmax.f32 %v3451_v3, 0.0  ;;  %v1442_v58 = vmax.f32 %v3455_v48, 0.0  ;;  %v3788_v54 = vld [vmem:[#allocation12_spill] sm:$0xff]  ;;  %v3789_v62 = vld [vmem:[#allocation13_spill] sm:$0xff] }
 0x25d   : > { %1478 = vst [vmem:[%s3054_s25 + $0xe8] sm:$0xff] %v1414_v32  ;;  %1479 = vst [vmem:[%s3054_s25 + $0xf0] sm:$0xff] %v1415_v57  ;;  %v1443_v34 = vmax.f32 %v3788_v54, 0.0  ;;  %v1444_v3 = vmax.f32 %v3789_v62, 0.0  ;;  %v1445_v48 = vmax.f32 %v3467_v0, 0.0  ;;  %v3790_v29 = vld [vmem:[#allocation14_spill] sm:$0xff] }
 0x25e   : > { %1480 = vst [vmem:[%s3054_s25 + $0xf8] sm:$0xff] %v1416_v41  ;;  %1481 = vst [vmem:[%s3054_s25 + $0x100] sm:$0xff] %v1417_v56  ;;  %v1446_v25 = vmax.f32 %v3790_v29, 0.0  ;;  %v1448_v22 = vmax.f32 %v3475_v53, 0.0 }
 0x25f   : > { %1482 = vst [vmem:[%s3054_s25 + $0x108] sm:$0xff] %v1418_v2  ;;  %1483 = vst [vmem:[%s3054_s25 + $0x110] sm:$0xff] %v1419_v45 }
 0x260   : > { %1484 = vst [vmem:[%s3054_s25 + $0x118] sm:$0xff] %v1420_v17  ;;  %1485 = vst [vmem:[%s3054_s25 + $0x120] sm:$0xff] %v1421_v63 }
 0x261   : > { %1486 = vst [vmem:[%s3054_s25 + $0x128] sm:$0xff] %v1422_v35  ;;  %1487 = vst [vmem:[%s3054_s25 + $0x130] sm:$0xff] %v1423_v30 }
 0x262   : > { %1488 = vst [vmem:[%s3054_s25 + $0x138] sm:$0xff] %v1424_v33  ;;  %1489 = vst [vmem:[%s3054_s25 + $0x140] sm:$0xff] %v1425_v37 }
 0x263   : > { %1490 = vst [vmem:[%s3054_s25 + $0x148] sm:$0xff] %v1426_v40  ;;  %1491 = vst [vmem:[%s3054_s25 + $0x150] sm:$0xff] %v1427_v44 }
 0x264   : > { %1492 = vst [vmem:[%s3054_s25 + $0x158] sm:$0xff] %v1428_v27  ;;  %1493 = vst [vmem:[%s3054_s25 + $0x160] sm:$0xff] %v1429_v16 }
 0x265   : > { %1494 = vst [vmem:[%s3054_s25 + $0x168] sm:$0xff] %v1430_v10  ;;  %1495 = vst [vmem:[%s3054_s25 + $0x170] sm:$0xff] %v1431_v49 }
 0x266   : > { %1496 = vst [vmem:[%s3054_s25 + $0x178] sm:$0xff] %v1432_v26  ;;  %1497 = vst [vmem:[%s3054_s25 + $0x180] sm:$0xff] %v1433_v1 }
 0x267   : > { %1498 = vst [vmem:[%s3054_s25 + $0x188] sm:$0xff] %v1434_v36  ;;  %1499 = vst [vmem:[%s3054_s25 + $0x190] sm:$0xff] %v1435_v5 }
 0x268   : > { %1500 = vst [vmem:[%s3054_s25 + $0x198] sm:$0xff] %v1436_v52  ;;  %1501 = vst [vmem:[%s3054_s25 + $0x1a0] sm:$0xff] %v1437_v59 }
 0x269   : > { %1502 = vst [vmem:[%s3054_s25 + $0x1a8] sm:$0xff] %v1438_v18  ;;  %1503 = vst [vmem:[%s3054_s25 + $0x1b0] sm:$0xff] %v1439_v19 }
 0x26a   : > { %1504 = vst [vmem:[%s3054_s25 + $0x1b8] sm:$0xff] %v1440_v46  ;;  %1505 = vst [vmem:[%s3054_s25 + $0x1c0] sm:$0xff] %v1441_v21 }
 0x26b   : > { %1506 = vst [vmem:[%s3054_s25 + $0x1c8] sm:$0xff] %v1442_v58  ;;  %1507 = vst [vmem:[%s3054_s25 + $0x1d0] sm:$0xff] %v1443_v34 }
 0x26c   : > { %1508 = vst [vmem:[%s3054_s25 + $0x1d8] sm:$0xff] %v1444_v3  ;;  %1509 = vst [vmem:[%s3054_s25 + $0x1e0] sm:$0xff] %v1445_v48 }
 0x26d   : > { %1510 = vst [vmem:[%s3054_s25 + $0x1e8] sm:$0xff] %v1446_v25  ;;  %1512 = vst [vmem:[%s3054_s25 + $0x1f8] sm:$0xff] %v1448_v22 }
 0x26e   : > { %1942 = shalt.err (!%p1939_p7)
}
 0x26f   : > { %s1943_s14 = scalar_lea.hbm %s3584_s7, 8192  ;;  %s1947_s17 = scalar_lea.hbm %s3658_s5, 16384 }
 0x270   : > { %p1944_p10 = scmp.ne.s32.totalorder %s3584_s7, %s1943_s14  ;;  %p1948_p13 = scmp.lt.s32.totalorder %s3584_s7, %s3658_s5 }
 0x271   : > { %p1949_p0 = scmp.lt.s32.totalorder %s1947_s17, %s1943_s14 }
 0x272   : > { %p1945_p11 = pnand %p1944_p10, %p2064_p6 }
 0x273   : > { %p1950_p1 = por %p1949_p0, %p1948_p13 }
 0x274   : > { %p1946_p12 = pneg %p1945_p11 }
 0x276   : > { %p1951_p2 = pnand %p1950_p1, %p1946_p12 }
 0x278   : > { %1954 = shalt.err (!%p1951_p2)
}
 0x279   : > { %s1992_s26 = smov 128   ;;  %s1993_s22 = smov 256  }
 0x27a   : > { %s1994_s6 = smov 8  }
 0x27b   : > { %1885 = dma.vmem_to_hbm [thread:$0]  (%p2064_p6), %s3594_s30, 8192, %s3584_s7, %s1514_s8, %s1992_s26, %s1993_s22, %s1994_s6  }
 0x27c PF: > { %s1541_s9 = sand.u32 1, %s1977_s18   ;;  %p1888_p3 = pnand %p1623_p9, %p2068_p8 }
 0x27d   : > { %s1542_s10 = scalar_lea.sflag [#allocation4], %s1541_s9 }
 0x27e   : > { %p1889_p4 = pneg %p1888_p3 }
 0x280   : > { %1972 = dma.done.wait (%p1889_p4), %s1542_s10, 8192  }
 0x281   : > { %1974 = vsyncadd (%p1889_p4), %s1542_s10, 4294959104  ;;  %p15_p5 = scmp.ge.s32.totalorder %s2050_s24, 4   ;;  %s3791_s18 = smov %s1981_s19 }
 0x282   : > { %s3792_s19 = smov %s1985_s20  ;;  %s3793_s20 = smov %s2062_s27 }
 0x283   : > { %s3794_s21 = smov %s2050_s24  ;;  %17 = sbr.rel (!%p15_p5) target bundleno = 3 (0x3), region = 127 }
 0x288   :  { %1547 = vsyncpa [#allocation4], 1 }
 0x289   :  { %1549 = vsyncpa [#allocation4 + $0x1], 1 }

</bundles_post_ra>
